<compile_context>
chip_gen: v6e
topology: v6e:2x2x1
jax: 0.10.0
libtpu: 0.0.40
codegen_flags: <defaults>
</compile_context>

<pallas_src>
import numpy as np
import jax
import jax.numpy as jnp
from jax.experimental import pallas as pl
from jax.experimental.pallas import tpu as pltpu

INPUT_SIZE = 3
HIDDEN_SIZE = 10
NUM_LAYERS = 2
OUT_SIZE = 3

IPAD = 8          # padded input feature dim for layer 0 (3 -> 8, NOT 128)
HS = 32           # per-gate lane slot (packed): hidden=10 padded to 32 lanes
G = 4 * HS        # packed gate width = 128 (i, f, g, o)
OP = 128          # padded fc output dim


def lstm_kernel(x_ref, wih0_ref, whh0_ref, b0_ref, w1_ref, b1_ref,
                wfc_ref, bfc_ref, out_ref, xg_ref):
    # x_ref   : (T*B, IPAD)  time-major padded input (row t*B + b), only 8 lanes wide
    # wih0_ref: (IPAD, G)    layer-0 input weights (packed gates, pre-transposed)
    # whh0_ref: (HS, G)      layer-0 recurrent weights
    # b0_ref  : (1, G)       layer-0 bias (b_ih + b_hh)
    # w1_ref  : (2*HS, G)    layer-1 [W_ih1; W_hh1] stacked on the K axis
    # b1_ref  : (1, G)       layer-1 bias (b_ih + b_hh)
    # wfc_ref : (HS, OP), bfc_ref: (1, OP)
    # out_ref : (B, OP)
    # xg_ref  : (T*B, G)     VMEM scratch holding the hoisted layer-0 projection
    B = out_ref.shape[0]
    T = x_ref.shape[0] // B

    # Hoisted layer-0 input projection + bias (K=8), materialized to VMEM scratch so
    # the unrolled recurrence re-reads one (B, G) slice per step instead of keeping
    # the full (T*B, G) product live in vregs.
    xg_ref[...] = (jnp.dot(x_ref[...], wih0_ref[...],
                           preferred_element_type=jnp.float32) + b0_ref[...])

    # Hoist weight/bias loads out of the recurrence. Layer-1 weight is split into its
    # two K=32 halves (static ref slices) so no per-step concatenate is needed.
    whh0 = whh0_ref[...]
    w1_ih = w1_ref[0 * HS:1 * HS, :]     # multiplies h0_t
    w1_hh = w1_ref[1 * HS:2 * HS, :]     # multiplies h1_{t-1}
    b1 = b1_ref[...]

    def gates_to_hc(gates, c):
        # Two full-width EUP passes over the packed (B, G) gates instead of four
        # narrow per-gate calls; sigmoid(x) == 0.5*(1 + tanh(0.5*x)) exactly.
        tg = jnp.tanh(gates)
        sg = 0.5 + 0.5 * jnp.tanh(0.5 * gates)
        i = sg[:, 0 * HS:1 * HS]
        f = sg[:, 1 * HS:2 * HS]
        g = tg[:, 2 * HS:3 * HS]
        o = sg[:, 3 * HS:4 * HS]
        c_new = f * c + i * g
        h_new = o * jnp.tanh(c_new)
        return h_new, c_new

    zeros = jnp.zeros((B, HS), jnp.float32)
    h0, c0, h1, c1 = zeros, zeros, zeros, zeros

    # Fused two-layer recurrence, fully unrolled (T is a small compile-time constant).
    for t in range(T):
        # Layer 0: only the recurrent matmul is inside the loop.
        g0 = xg_ref[t * B:(t + 1) * B, :] + jnp.dot(
            h0, whh0, preferred_element_type=jnp.float32)
        h0, c0 = gates_to_hc(g0, c0)
        # Layer 1: two K=32 dots (no concatenate on the dependent path).
        g1 = (jnp.dot(h0, w1_ih, preferred_element_type=jnp.float32)
              + jnp.dot(h1, w1_hh, preferred_element_type=jnp.float32) + b1)
        h1, c1 = gates_to_hc(g1, c1)

    # Final fully-connected layer on the last time step's layer-1 hidden state.
    out_ref[...] = (jnp.dot(h1, wfc_ref[...], preferred_element_type=jnp.float32)
                    + bfc_ref[...])


def lstm_predictor_forward(x, params):
    """x: (B, T, INPUT_SIZE) f32 -> (B, OUT_SIZE) f32."""
    B, T, F = x.shape
    assert F == INPUT_SIZE, f"expected {INPUT_SIZE} input features, got {F}"
    x_tm = jnp.transpose(x, (1, 0, 2)).reshape(T * B, INPUT_SIZE)
    x_pad = jnp.zeros((T * B, IPAD), jnp.float32).at[:, :INPUT_SIZE].set(x_tm)
    # Guard against silent truncation of T = rows // B inside the kernel.
    assert x_pad.shape[0] == T * B and x_pad.shape[0] % B == 0

    out_pad = pl.pallas_call(
        lstm_kernel,
        out_shape=jax.ShapeDtypeStruct((B, OP), jnp.float32),
        in_specs=[pl.BlockSpec(memory_space=pltpu.MemorySpace.VMEM)] * 8,
        out_specs=pl.BlockSpec(memory_space=pltpu.MemorySpace.VMEM),
        scratch_shapes=[pltpu.VMEM((T * B, G), jnp.float32)],
    )(x_pad, params["wih0"], params["whh0"], params["b0"],
      params["w1"], params["b1"], params["wfc"], params["bfc"])
    return out_pad[:, :OUT_SIZE]


def init_params(key):
    """Deterministic PyTorch-style init: U(-1/sqrt(H), 1/sqrt(H)) for all LSTM/fc params."""
    k = 1.0 / np.sqrt(HIDDEN_SIZE)
    keys = jax.random.split(key, 4 * NUM_LAYERS + 2)
    raw = {}
    idx = 0
    for l in range(NUM_LAYERS):
        in_sz = INPUT_SIZE if l == 0 else HIDDEN_SIZE
        raw[f"W_ih{l}"] = jax.random.uniform(keys[idx], (4 * HIDDEN_SIZE, in_sz),
                                             jnp.float32, -k, k); idx += 1
        raw[f"W_hh{l}"] = jax.random.uniform(keys[idx], (4 * HIDDEN_SIZE, HIDDEN_SIZE),
                                             jnp.float32, -k, k); idx += 1
        raw[f"b_ih{l}"] = jax.random.uniform(keys[idx], (4 * HIDDEN_SIZE,),
                                             jnp.float32, -k, k); idx += 1
        raw[f"b_hh{l}"] = jax.random.uniform(keys[idx], (4 * HIDDEN_SIZE,),
                                             jnp.float32, -k, k); idx += 1
    raw["W_fc"] = jax.random.uniform(keys[idx], (OUT_SIZE, HIDDEN_SIZE),
                                     jnp.float32, -k, k); idx += 1
    raw["b_fc"] = jax.random.uniform(keys[idx], (OUT_SIZE,), jnp.float32, -k, k)

    H = HIDDEN_SIZE

    # Layer 0: packed gates (32 lanes per gate), pre-transposed so gates = x @ W.
    # Input K axis padded only to IPAD=8 (rows 3..7 zero).
    wih0 = np.zeros((IPAD, G), np.float32)
    whh0 = np.zeros((HS, G), np.float32)
    b0 = np.zeros((1, G), np.float32)
    Wih = np.asarray(raw["W_ih0"]); Whh = np.asarray(raw["W_hh0"])
    bsum = np.asarray(raw["b_ih0"]) + np.asarray(raw["b_hh0"])
    for gate in range(4):
        wih0[:INPUT_SIZE, gate * HS:gate * HS + H] = Wih[gate * H:(gate + 1) * H, :].T
        whh0[:H, gate * HS:gate * HS + H] = Whh[gate * H:(gate + 1) * H, :].T
        b0[0, gate * HS:gate * HS + H] = bsum[gate * H:(gate + 1) * H]

    # Layer 1: stack [W_ih1; W_hh1] along K (rows 0:HS for h0 input, HS:2*HS for h1).
    w1 = np.zeros((2 * HS, G), np.float32)
    b1 = np.zeros((1, G), np.float32)
    Wih = np.asarray(raw["W_ih1"]); Whh = np.asarray(raw["W_hh1"])
    bsum = np.asarray(raw["b_ih1"]) + np.asarray(raw["b_hh1"])
    for gate in range(4):
        w1[:H, gate * HS:gate * HS + H] = Wih[gate * H:(gate + 1) * H, :].T
        w1[HS:HS + H, gate * HS:gate * HS + H] = Whh[gate * H:(gate + 1) * H, :].T
        b1[0, gate * HS:gate * HS + H] = bsum[gate * H:(gate + 1) * H]

    wfc = np.zeros((HS, OP), np.float32)
    wfc[:H, :OUT_SIZE] = np.asarray(raw["W_fc"]).T
    bfc = np.zeros((1, OP), np.float32)
    bfc[0, :OUT_SIZE] = np.asarray(raw["b_fc"])

    params = dict(
        wih0=jnp.asarray(wih0), whh0=jnp.asarray(whh0), b0=jnp.asarray(b0),
        w1=jnp.asarray(w1), b1=jnp.asarray(b1),
        wfc=jnp.asarray(wfc), bfc=jnp.asarray(bfc),
    )
    return raw, params


def lstm_ref(x, raw):
    """Pure numpy reference with PyTorch LSTM semantics (gate order i, f, g, o)."""
    def sigmoid(z):
        return 1.0 / (1.0 + np.exp(-z))

    xl = np.asarray(x, dtype=np.float32)
    B, T, _ = xl.shape
    H = HIDDEN_SIZE
    h = np.zeros((B, H), np.float32)
    for l in range(NUM_LAYERS):
        Wih = np.asarray(raw[f"W_ih{l}"])
        Whh = np.asarray(raw[f"W_hh{l}"])
        b = np.asarray(raw[f"b_ih{l}"]) + np.asarray(raw[f"b_hh{l}"])
        h = np.zeros((B, H), np.float32)
        c = np.zeros((B, H), np.float32)
        outs = []
        for t in range(T):
            gates = xl[:, t, :] @ Wih.T + h @ Whh.T + b
            i = sigmoid(gates[:, 0:H])
            f = sigmoid(gates[:, H:2 * H])
            g = np.tanh(gates[:, 2 * H:3 * H])
            o = sigmoid(gates[:, 3 * H:4 * H])
            c = f * c + i * g
            h = o * np.tanh(c)
            outs.append(h)
        xl = np.stack(outs, axis=1)
    return h @ np.asarray(raw["W_fc"]).T + np.asarray(raw["b_fc"])


if __name__ == "__main__":
    B, T = 2, 8
    x = jax.random.normal(jax.random.PRNGKey(0), (B, T, INPUT_SIZE), jnp.float32)
    raw, params = init_params(jax.random.PRNGKey(42))

    out = lstm_predictor_forward(x, params)
    out = jax.block_until_ready(out)

    ref = lstm_ref(x, raw)
    np.testing.assert_allclose(np.asarray(out), ref, rtol=1e-4, atol=1e-4)
    print("KERNEL_OK")
</pallas_src>

<mosaic_0001>
module attributes {stable_mosaic.version = 11 : i64} {
  func.func @lstm_kernel(%arg0: memref<16x8xf32, #tpu.memory_space<vmem>>, %arg1: memref<8x128xf32, #tpu.memory_space<vmem>>, %arg2: memref<32x128xf32, #tpu.memory_space<vmem>>, %arg3: memref<1x128xf32, #tpu.memory_space<vmem>>, %arg4: memref<64x128xf32, #tpu.memory_space<vmem>>, %arg5: memref<1x128xf32, #tpu.memory_space<vmem>>, %arg6: memref<32x128xf32, #tpu.memory_space<vmem>>, %arg7: memref<1x128xf32, #tpu.memory_space<vmem>>, %arg8: memref<2x128xf32, #tpu.memory_space<vmem>>, %arg9: memref<16x128xf32, #tpu.memory_space<vmem>>) attributes {dimension_semantics = [], scalar_prefetch = 0 : i64, scratch_operands = 1 : i64, tpu.core_type = #tpu.core_type<tc>} {
    %c0 = arith.constant 0 : index
    %c0_0 = arith.constant 0 : index
    %0 = vector.load %arg0[%c0, %c0_0] : memref<16x8xf32, #tpu.memory_space<vmem>>, vector<16x8xf32>
    %c0_1 = arith.constant 0 : index
    %c0_2 = arith.constant 0 : index
    %1 = vector.load %arg1[%c0_1, %c0_2] : memref<8x128xf32, #tpu.memory_space<vmem>>, vector<8x128xf32>
    %cst = arith.constant dense<0.000000e+00> : vector<16x128xf32>
    %2 = tpu.matmul %0, %1, %cst {dimension_numbers = #tpu.dot_dimension_numbers<[1], [0], [0], [1], [0, 0, 1, 1], [], []>} : vector<16x8xf32>, vector<8x128xf32>, vector<16x128xf32> -> vector<16x128xf32>
    %c0_3 = arith.constant 0 : index
    %c0_4 = arith.constant 0 : index
    %3 = vector.load %arg3[%c0_3, %c0_4] : memref<1x128xf32, #tpu.memory_space<vmem>>, vector<1x128xf32>
    %4 = vector.broadcast %3 : vector<1x128xf32> to vector<16x128xf32>
    %5 = arith.addf %2, %4 : vector<16x128xf32>
    %c0_5 = arith.constant 0 : index
    %c0_6 = arith.constant 0 : index
    %6 = vector.load %arg9[%c0_5, %c0_6] : memref<16x128xf32, #tpu.memory_space<vmem>>, vector<16x128xf32>
    tpu.vector_store %arg9[%c0_5, %c0_6], %5 {strides = array<i32>} : memref<16x128xf32, #tpu.memory_space<vmem>>, vector<16x128xf32>,
    %c0_7 = arith.constant 0 : index
    %c0_8 = arith.constant 0 : index
    %7 = vector.load %arg2[%c0_7, %c0_8] : memref<32x128xf32, #tpu.memory_space<vmem>>, vector<32x128xf32>
    %c0_9 = arith.constant 0 : index
    %c0_10 = arith.constant 0 : index
    %8 = vector.load %arg4[%c0_9, %c0_10] : memref<64x128xf32, #tpu.memory_space<vmem>>, vector<32x128xf32>
    %c32 = arith.constant 32 : index
    %c0_11 = arith.constant 0 : index
    %9 = vector.load %arg4[%c32, %c0_11] : memref<64x128xf32, #tpu.memory_space<vmem>>, vector<32x128xf32>
    %c0_12 = arith.constant 0 : index
    %c0_13 = arith.constant 0 : index
    %10 = vector.load %arg5[%c0_12, %c0_13] : memref<1x128xf32, #tpu.memory_space<vmem>>, vector<1x128xf32>
    %cst_14 = arith.constant 0.000000e+00 : f32
    %11 = vector.broadcast %cst_14 : f32 to vector<2x32xf32>
    %c0_15 = arith.constant 0 : index
    %c0_16 = arith.constant 0 : index
    %12 = vector.load %arg9[%c0_15, %c0_16] : memref<16x128xf32, #tpu.memory_space<vmem>>, vector<2x128xf32>
    %cst_17 = arith.constant dense<0.000000e+00> : vector<2x128xf32>
    %13 = tpu.matmul %11, %7, %cst_17 {dimension_numbers = #tpu.dot_dimension_numbers<[1], [0], [0], [1], [0, 0, 1, 1], [], []>} : vector<2x32xf32>, vector<32x128xf32>, vector<2x128xf32> -> vector<2x128xf32>
    %14 = arith.addf %12, %13 : vector<2x128xf32>
    %15 = math.tanh %14 : vector<2x128xf32>
    %cst_18 = arith.constant 5.000000e-01 : f32
    %16 = vector.broadcast %cst_18 : f32 to vector<2x128xf32>
    %17 = arith.mulf %16, %14 : vector<2x128xf32>
    %18 = math.tanh %17 : vector<2x128xf32>
    %cst_19 = arith.constant 5.000000e-01 : f32
    %19 = vector.broadcast %cst_19 : f32 to vector<2x128xf32>
    %20 = arith.mulf %19, %18 : vector<2x128xf32>
    %cst_20 = arith.constant 5.000000e-01 : f32
    %21 = vector.broadcast %cst_20 : f32 to vector<2x128xf32>
    %22 = arith.addf %21, %20 : vector<2x128xf32>
    %23 = vector.extract_strided_slice %22 {offsets = [0, 0], sizes = [2, 32], strides = [1, 1]} : vector<2x128xf32> to vector<2x32xf32>
    %24 = vector.extract_strided_slice %22 {offsets = [0, 32], sizes = [2, 32], strides = [1, 1]} : vector<2x128xf32> to vector<2x32xf32>
    %25 = vector.extract_strided_slice %15 {offsets = [0, 64], sizes = [2, 32], strides = [1, 1]} : vector<2x128xf32> to vector<2x32xf32>
    %26 = vector.extract_strided_slice %22 {offsets = [0, 96], sizes = [2, 32], strides = [1, 1]} : vector<2x128xf32> to vector<2x32xf32>
    %27 = arith.mulf %24, %11 : vector<2x32xf32>
    %28 = arith.mulf %23, %25 : vector<2x32xf32>
    %29 = arith.addf %27, %28 : vector<2x32xf32>
    %30 = math.tanh %29 : vector<2x32xf32>
    %31 = arith.mulf %26, %30 : vector<2x32xf32>
    %cst_21 = arith.constant dense<0.000000e+00> : vector<2x128xf32>
    %32 = tpu.matmul %31, %8, %cst_21 {dimension_numbers = #tpu.dot_dimension_numbers<[1], [0], [0], [1], [0, 0, 1, 1], [], []>} : vector<2x32xf32>, vector<32x128xf32>, vector<2x128xf32> -> vector<2x128xf32>
    %cst_22 = arith.constant dense<0.000000e+00> : vector<2x128xf32>
    %33 = tpu.matmul %11, %9, %cst_22 {dimension_numbers = #tpu.dot_dimension_numbers<[1], [0], [0], [1], [0, 0, 1, 1], [], []>} : vector<2x32xf32>, vector<32x128xf32>, vector<2x128xf32> -> vector<2x128xf32>
    %34 = arith.addf %32, %33 : vector<2x128xf32>
    %35 = vector.broadcast %10 : vector<1x128xf32> to vector<2x128xf32>
    %36 = arith.addf %34, %35 : vector<2x128xf32>
    %37 = math.tanh %36 : vector<2x128xf32>
    %cst_23 = arith.constant 5.000000e-01 : f32
    %38 = vector.broadcast %cst_23 : f32 to vector<2x128xf32>
    %39 = arith.mulf %38, %36 : vector<2x128xf32>
    %40 = math.tanh %39 : vector<2x128xf32>
    %cst_24 = arith.constant 5.000000e-01 : f32
    %41 = vector.broadcast %cst_24 : f32 to vector<2x128xf32>
    %42 = arith.mulf %41, %40 : vector<2x128xf32>
    %cst_25 = arith.constant 5.000000e-01 : f32
    %43 = vector.broadcast %cst_25 : f32 to vector<2x128xf32>
    %44 = arith.addf %43, %42 : vector<2x128xf32>
    %45 = vector.extract_strided_slice %44 {offsets = [0, 0], sizes = [2, 32], strides = [1, 1]} : vector<2x128xf32> to vector<2x32xf32>
    %46 = vector.extract_strided_slice %44 {offsets = [0, 32], sizes = [2, 32], strides = [1, 1]} : vector<2x128xf32> to vector<2x32xf32>
    %47 = vector.extract_strided_slice %37 {offsets = [0, 64], sizes = [2, 32], strides = [1, 1]} : vector<2x128xf32> to vector<2x32xf32>
    %48 = vector.extract_strided_slice %44 {offsets = [0, 96], sizes = [2, 32], strides = [1, 1]} : vector<2x128xf32> to vector<2x32xf32>
    %49 = arith.mulf %46, %11 : vector<2x32xf32>
    %50 = arith.mulf %45, %47 : vector<2x32xf32>
    %51 = arith.addf %49, %50 : vector<2x32xf32>
    %52 = math.tanh %51 : vector<2x32xf32>
    %53 = arith.mulf %48, %52 : vector<2x32xf32>
    %c2 = arith.constant 2 : index
    %c0_26 = arith.constant 0 : index
    %54 = vector.load %arg9[%c2, %c0_26] : memref<16x128xf32, #tpu.memory_space<vmem>>, vector<2x128xf32>
    %cst_27 = arith.constant dense<0.000000e+00> : vector<2x128xf32>
    %55 = tpu.matmul %31, %7, %cst_27 {dimension_numbers = #tpu.dot_dimension_numbers<[1], [0], [0], [1], [0, 0, 1, 1], [], []>} : vector<2x32xf32>, vector<32x128xf32>, vector<2x128xf32> -> vector<2x128xf32>
    %56 = arith.addf %54, %55 : vector<2x128xf32>
    %57 = math.tanh %56 : vector<2x128xf32>
    %cst_28 = arith.constant 5.000000e-01 : f32
    %58 = vector.broadcast %cst_28 : f32 to vector<2x128xf32>
    %59 = arith.mulf %58, %56 : vector<2x128xf32>
    %60 = math.tanh %59 : vector<2x128xf32>
    %cst_29 = arith.constant 5.000000e-01 : f32
    %61 = vector.broadcast %cst_29 : f32 to vector<2x128xf32>
    %62 = arith.mulf %61, %60 : vector<2x128xf32>
    %cst_30 = arith.constant 5.000000e-01 : f32
    %63 = vector.broadcast %cst_30 : f32 to vector<2x128xf32>
    %64 = arith.addf %63, %62 : vector<2x128xf32>
    %65 = vector.extract_strided_slice %64 {offsets = [0, 0], sizes = [2, 32], strides = [1, 1]} : vector<2x128xf32> to vector<2x32xf32>
    %66 = vector.extract_strided_slice %64 {offsets = [0, 32], sizes = [2, 32], strides = [1, 1]} : vector<2x128xf32> to vector<2x32xf32>
    %67 = vector.extract_strided_slice %57 {offsets = [0, 64], sizes = [2, 32], strides = [1, 1]} : vector<2x128xf32> to vector<2x32xf32>
    %68 = vector.extract_strided_slice %64 {offsets = [0, 96], sizes = [2, 32], strides = [1, 1]} : vector<2x128xf32> to vector<2x32xf32>
    %69 = arith.mulf %66, %29 : vector<2x32xf32>
    %70 = arith.mulf %65, %67 : vector<2x32xf32>
    %71 = arith.addf %69, %70 : vector<2x32xf32>
    %72 = math.tanh %71 : vector<2x32xf32>
    %73 = arith.mulf %68, %72 : vector<2x32xf32>
    %cst_31 = arith.constant dense<0.000000e+00> : vector<2x128xf32>
    %74 = tpu.matmul %73, %8, %cst_31 {dimension_numbers = #tpu.dot_dimension_numbers<[1], [0], [0], [1], [0, 0, 1, 1], [], []>} : vector<2x32xf32>, vector<32x128xf32>, vector<2x128xf32> -> vector<2x128xf32>
    %cst_32 = arith.constant dense<0.000000e+00> : vector<2x128xf32>
    %75 = tpu.matmul %53, %9, %cst_32 {dimension_numbers = #tpu.dot_dimension_numbers<[1], [0], [0], [1], [0, 0, 1, 1], [], []>} : vector<2x32xf32>, vector<32x128xf32>, vector<2x128xf32> -> vector<2x128xf32>
    %76 = arith.addf %74, %75 : vector<2x128xf32>
    %77 = vector.broadcast %10 : vector<1x128xf32> to vector<2x128xf32>
    %78 = arith.addf %76, %77 : vector<2x128xf32>
    %79 = math.tanh %78 : vector<2x128xf32>
    %cst_33 = arith.constant 5.000000e-01 : f32
    %80 = vector.broadcast %cst_33 : f32 to vector<2x128xf32>
    %81 = arith.mulf %80, %78 : vector<2x128xf32>
    %82 = math.tanh %81 : vector<2x128xf32>
    %cst_34 = arith.constant 5.000000e-01 : f32
    %83 = vector.broadcast %cst_34 : f32 to vector<2x128xf32>
    %84 = arith.mulf %83, %82 : vector<2x128xf32>
    %cst_35 = arith.constant 5.000000e-01 : f32
    %85 = vector.broadcast %cst_35 : f32 to vector<2x128xf32>
    %86 = arith.addf %85, %84 : vector<2x128xf32>
    %87 = vector.extract_strided_slice %86 {offsets = [0, 0], sizes = [2, 32], strides = [1, 1]} : vector<2x128xf32> to vector<2x32xf32>
    %88 = vector.extract_strided_slice %86 {offsets = [0, 32], sizes = [2, 32], strides = [1, 1]} : vector<2x128xf32> to vector<2x32xf32>
    %89 = vector.extract_strided_slice %79 {offsets = [0, 64], sizes = [2, 32], strides = [1, 1]} : vector<2x128xf32> to vector<2x32xf32>
    %90 = vector.extract_strided_slice %86 {offsets = [0, 96], sizes = [2, 32], strides = [1, 1]} : vector<2x128xf32> to vector<2x32xf32>
    %91 = arith.mulf %88, %51 : vector<2x32xf32>
    %92 = arith.mulf %87, %89 : vector<2x32xf32>
    %93 = arith.addf %91, %92 : vector<2x32xf32>
    %94 = math.tanh %93 : vector<2x32xf32>
    %95 = arith.mulf %90, %94 : vector<2x32xf32>
    %c4 = arith.constant 4 : index
    %c0_36 = arith.constant 0 : index
    %96 = vector.load %arg9[%c4, %c0_36] : memref<16x128xf32, #tpu.memory_space<vmem>>, vector<2x128xf32>
    %cst_37 = arith.constant dense<0.000000e+00> : vector<2x128xf32>
    %97 = tpu.matmul %73, %7, %cst_37 {dimension_numbers = #tpu.dot_dimension_numbers<[1], [0], [0], [1], [0, 0, 1, 1], [], []>} : vector<2x32xf32>, vector<32x128xf32>, vector<2x128xf32> -> vector<2x128xf32>
    %98 = arith.addf %96, %97 : vector<2x128xf32>
    %99 = math.tanh %98 : vector<2x128xf32>
    %cst_38 = arith.constant 5.000000e-01 : f32
    %100 = vector.broadcast %cst_38 : f32 to vector<2x128xf32>
    %101 = arith.mulf %100, %98 : vector<2x128xf32>
    %102 = math.tanh %101 : vector<2x128xf32>
    %cst_39 = arith.constant 5.000000e-01 : f32
    %103 = vector.broadcast %cst_39 : f32 to vector<2x128xf32>
    %104 = arith.mulf %103, %102 : vector<2x128xf32>
    %cst_40 = arith.constant 5.000000e-01 : f32
    %105 = vector.broadcast %cst_40 : f32 to vector<2x128xf32>
    %106 = arith.addf %105, %104 : vector<2x128xf32>
    %107 = vector.extract_strided_slice %106 {offsets = [0, 0], sizes = [2, 32], strides = [1, 1]} : vector<2x128xf32> to vector<2x32xf32>
    %108 = vector.extract_strided_slice %106 {offsets = [0, 32], sizes = [2, 32], strides = [1, 1]} : vector<2x128xf32> to vector<2x32xf32>
    %109 = vector.extract_strided_slice %99 {offsets = [0, 64], sizes = [2, 32], strides = [1, 1]} : vector<2x128xf32> to vector<2x32xf32>
    %110 = vector.extract_strided_slice %106 {offsets = [0, 96], sizes = [2, 32], strides = [1, 1]} : vector<2x128xf32> to vector<2x32xf32>
    %111 = arith.mulf %108, %71 : vector<2x32xf32>
    %112 = arith.mulf %107, %109 : vector<2x32xf32>
    %113 = arith.addf %111, %112 : vector<2x32xf32>
    %114 = math.tanh %113 : vector<2x32xf32>
    %115 = arith.mulf %110, %114 : vector<2x32xf32>
    %cst_41 = arith.constant dense<0.000000e+00> : vector<2x128xf32>
    %116 = tpu.matmul %115, %8, %cst_41 {dimension_numbers = #tpu.dot_dimension_numbers<[1], [0], [0], [1], [0, 0, 1, 1], [], []>} : vector<2x32xf32>, vector<32x128xf32>, vector<2x128xf32> -> vector<2x128xf32>
    %cst_42 = arith.constant dense<0.000000e+00> : vector<2x128xf32>
    %117 = tpu.matmul %95, %9, %cst_42 {dimension_numbers = #tpu.dot_dimension_numbers<[1], [0], [0], [1], [0, 0, 1, 1], [], []>} : vector<2x32xf32>, vector<32x128xf32>, vector<2x128xf32> -> vector<2x128xf32>
    %118 = arith.addf %116, %117 : vector<2x128xf32>
    %119 = vector.broadcast %10 : vector<1x128xf32> to vector<2x128xf32>
    %120 = arith.addf %118, %119 : vector<2x128xf32>
    %121 = math.tanh %120 : vector<2x128xf32>
    %cst_43 = arith.constant 5.000000e-01 : f32
    %122 = vector.broadcast %cst_43 : f32 to vector<2x128xf32>
    %123 = arith.mulf %122, %120 : vector<2x128xf32>
    %124 = math.tanh %123 : vector<2x128xf32>
    %cst_44 = arith.constant 5.000000e-01 : f32
    %125 = vector.broadcast %cst_44 : f32 to vector<2x128xf32>
    %126 = arith.mulf %125, %124 : vector<2x128xf32>
    %cst_45 = arith.constant 5.000000e-01 : f32
    %127 = vector.broadcast %cst_45 : f32 to vector<2x128xf32>
    %128 = arith.addf %127, %126 : vector<2x128xf32>
    %129 = vector.extract_strided_slice %128 {offsets = [0, 0], sizes = [2, 32], strides = [1, 1]} : vector<2x128xf32> to vector<2x32xf32>
    %130 = vector.extract_strided_slice %128 {offsets = [0, 32], sizes = [2, 32], strides = [1, 1]} : vector<2x128xf32> to vector<2x32xf32>
    %131 = vector.extract_strided_slice %121 {offsets = [0, 64], sizes = [2, 32], strides = [1, 1]} : vector<2x128xf32> to vector<2x32xf32>
    %132 = vector.extract_strided_slice %128 {offsets = [0, 96], sizes = [2, 32], strides = [1, 1]} : vector<2x128xf32> to vector<2x32xf32>
    %133 = arith.mulf %130, %93 : vector<2x32xf32>
    %134 = arith.mulf %129, %131 : vector<2x32xf32>
    %135 = arith.addf %133, %134 : vector<2x32xf32>
    %136 = math.tanh %135 : vector<2x32xf32>
    %137 = arith.mulf %132, %136 : vector<2x32xf32>
    %c6 = arith.constant 6 : index
    %c0_46 = arith.constant 0 : index
    %138 = vector.load %arg9[%c6, %c0_46] : memref<16x128xf32, #tpu.memory_space<vmem>>, vector<2x128xf32>
    %cst_47 = arith.constant dense<0.000000e+00> : vector<2x128xf32>
    %139 = tpu.matmul %115, %7, %cst_47 {dimension_numbers = #tpu.dot_dimension_numbers<[1], [0], [0], [1], [0, 0, 1, 1], [], []>} : vector<2x32xf32>, vector<32x128xf32>, vector<2x128xf32> -> vector<2x128xf32>
    %140 = arith.addf %138, %139 : vector<2x128xf32>
    %141 = math.tanh %140 : vector<2x128xf32>
    %cst_48 = arith.constant 5.000000e-01 : f32
    %142 = vector.broadcast %cst_48 : f32 to vector<2x128xf32>
    %143 = arith.mulf %142, %140 : vector<2x128xf32>
    %144 = math.tanh %143 : vector<2x128xf32>
    %cst_49 = arith.constant 5.000000e-01 : f32
    %145 = vector.broadcast %cst_49 : f32 to vector<2x128xf32>
    %146 = arith.mulf %145, %144 : vector<2x128xf32>
    %cst_50 = arith.constant 5.000000e-01 : f32
    %147 = vector.broadcast %cst_50 : f32 to vector<2x128xf32>
    %148 = arith.addf %147, %146 : vector<2x128xf32>
    %149 = vector.extract_strided_slice %148 {offsets = [0, 0], sizes = [2, 32], strides = [1, 1]} : vector<2x128xf32> to vector<2x32xf32>
    %150 = vector.extract_strided_slice %148 {offsets = [0, 32], sizes = [2, 32], strides = [1, 1]} : vector<2x128xf32> to vector<2x32xf32>
    %151 = vector.extract_strided_slice %141 {offsets = [0, 64], sizes = [2, 32], strides = [1, 1]} : vector<2x128xf32> to vector<2x32xf32>
    %152 = vector.extract_strided_slice %148 {offsets = [0, 96], sizes = [2, 32], strides = [1, 1]} : vector<2x128xf32> to vector<2x32xf32>
    %153 = arith.mulf %150, %113 : vector<2x32xf32>
    %154 = arith.mulf %149, %151 : vector<2x32xf32>
    %155 = arith.addf %153, %154 : vector<2x32xf32>
    %156 = math.tanh %155 : vector<2x32xf32>
    %157 = arith.mulf %152, %156 : vector<2x32xf32>
    %cst_51 = arith.constant dense<0.000000e+00> : vector<2x128xf32>
    %158 = tpu.matmul %157, %8, %cst_51 {dimension_numbers = #tpu.dot_dimension_numbers<[1], [0], [0], [1], [0, 0, 1, 1], [], []>} : vector<2x32xf32>, vector<32x128xf32>, vector<2x128xf32> -> vector<2x128xf32>
    %cst_52 = arith.constant dense<0.000000e+00> : vector<2x128xf32>
    %159 = tpu.matmul %137, %9, %cst_52 {dimension_numbers = #tpu.dot_dimension_numbers<[1], [0], [0], [1], [0, 0, 1, 1], [], []>} : vector<2x32xf32>, vector<32x128xf32>, vector<2x128xf32> -> vector<2x128xf32>
    %160 = arith.addf %158, %159 : vector<2x128xf32>
    %161 = vector.broadcast %10 : vector<1x128xf32> to vector<2x128xf32>
    %162 = arith.addf %160, %161 : vector<2x128xf32>
    %163 = math.tanh %162 : vector<2x128xf32>
    %cst_53 = arith.constant 5.000000e-01 : f32
    %164 = vector.broadcast %cst_53 : f32 to vector<2x128xf32>
    %165 = arith.mulf %164, %162 : vector<2x128xf32>
    %166 = math.tanh %165 : vector<2x128xf32>
    %cst_54 = arith.constant 5.000000e-01 : f32
    %167 = vector.broadcast %cst_54 : f32 to vector<2x128xf32>
    %168 = arith.mulf %167, %166 : vector<2x128xf32>
    %cst_55 = arith.constant 5.000000e-01 : f32
    %169 = vector.broadcast %cst_55 : f32 to vector<2x128xf32>
    %170 = arith.addf %169, %168 : vector<2x128xf32>
    %171 = vector.extract_strided_slice %170 {offsets = [0, 0], sizes = [2, 32], strides = [1, 1]} : vector<2x128xf32> to vector<2x32xf32>
    %172 = vector.extract_strided_slice %170 {offsets = [0, 32], sizes = [2, 32], strides = [1, 1]} : vector<2x128xf32> to vector<2x32xf32>
    %173 = vector.extract_strided_slice %163 {offsets = [0, 64], sizes = [2, 32], strides = [1, 1]} : vector<2x128xf32> to vector<2x32xf32>
    %174 = vector.extract_strided_slice %170 {offsets = [0, 96], sizes = [2, 32], strides = [1, 1]} : vector<2x128xf32> to vector<2x32xf32>
    %175 = arith.mulf %172, %135 : vector<2x32xf32>
    %176 = arith.mulf %171, %173 : vector<2x32xf32>
    %177 = arith.addf %175, %176 : vector<2x32xf32>
    %178 = math.tanh %177 : vector<2x32xf32>
    %179 = arith.mulf %174, %178 : vector<2x32xf32>
    %c8 = arith.constant 8 : index
    %c0_56 = arith.constant 0 : index
    %180 = vector.load %arg9[%c8, %c0_56] : memref<16x128xf32, #tpu.memory_space<vmem>>, vector<2x128xf32>
    %cst_57 = arith.constant dense<0.000000e+00> : vector<2x128xf32>
    %181 = tpu.matmul %157, %7, %cst_57 {dimension_numbers = #tpu.dot_dimension_numbers<[1], [0], [0], [1], [0, 0, 1, 1], [], []>} : vector<2x32xf32>, vector<32x128xf32>, vector<2x128xf32> -> vector<2x128xf32>
    %182 = arith.addf %180, %181 : vector<2x128xf32>
    %183 = math.tanh %182 : vector<2x128xf32>
    %cst_58 = arith.constant 5.000000e-01 : f32
    %184 = vector.broadcast %cst_58 : f32 to vector<2x128xf32>
    %185 = arith.mulf %184, %182 : vector<2x128xf32>
    %186 = math.tanh %185 : vector<2x128xf32>
    %cst_59 = arith.constant 5.000000e-01 : f32
    %187 = vector.broadcast %cst_59 : f32 to vector<2x128xf32>
    %188 = arith.mulf %187, %186 : vector<2x128xf32>
    %cst_60 = arith.constant 5.000000e-01 : f32
    %189 = vector.broadcast %cst_60 : f32 to vector<2x128xf32>
    %190 = arith.addf %189, %188 : vector<2x128xf32>
    %191 = vector.extract_strided_slice %190 {offsets = [0, 0], sizes = [2, 32], strides = [1, 1]} : vector<2x128xf32> to vector<2x32xf32>
    %192 = vector.extract_strided_slice %190 {offsets = [0, 32], sizes = [2, 32], strides = [1, 1]} : vector<2x128xf32> to vector<2x32xf32>
    %193 = vector.extract_strided_slice %183 {offsets = [0, 64], sizes = [2, 32], strides = [1, 1]} : vector<2x128xf32> to vector<2x32xf32>
    %194 = vector.extract_strided_slice %190 {offsets = [0, 96], sizes = [2, 32], strides = [1, 1]} : vector<2x128xf32> to vector<2x32xf32>
    %195 = arith.mulf %192, %155 : vector<2x32xf32>
    %196 = arith.mulf %191, %193 : vector<2x32xf32>
    %197 = arith.addf %195, %196 : vector<2x32xf32>
    %198 = math.tanh %197 : vector<2x32xf32>
    %199 = arith.mulf %194, %198 : vector<2x32xf32>
    %cst_61 = arith.constant dense<0.000000e+00> : vector<2x128xf32>
    %200 = tpu.matmul %199, %8, %cst_61 {dimension_numbers = #tpu.dot_dimension_numbers<[1], [0], [0], [1], [0, 0, 1, 1], [], []>} : vector<2x32xf32>, vector<32x128xf32>, vector<2x128xf32> -> vector<2x128xf32>
    %cst_62 = arith.constant dense<0.000000e+00> : vector<2x128xf32>
    %201 = tpu.matmul %179, %9, %cst_62 {dimension_numbers = #tpu.dot_dimension_numbers<[1], [0], [0], [1], [0, 0, 1, 1], [], []>} : vector<2x32xf32>, vector<32x128xf32>, vector<2x128xf32> -> vector<2x128xf32>
    %202 = arith.addf %200, %201 : vector<2x128xf32>
    %203 = vector.broadcast %10 : vector<1x128xf32> to vector<2x128xf32>
    %204 = arith.addf %202, %203 : vector<2x128xf32>
    %205 = math.tanh %204 : vector<2x128xf32>
    %cst_63 = arith.constant 5.000000e-01 : f32
    %206 = vector.broadcast %cst_63 : f32 to vector<2x128xf32>
    %207 = arith.mulf %206, %204 : vector<2x128xf32>
    %208 = math.tanh %207 : vector<2x128xf32>
    %cst_64 = arith.constant 5.000000e-01 : f32
    %209 = vector.broadcast %cst_64 : f32 to vector<2x128xf32>
    %210 = arith.mulf %209, %208 : vector<2x128xf32>
    %cst_65 = arith.constant 5.000000e-01 : f32
    %211 = vector.broadcast %cst_65 : f32 to vector<2x128xf32>
    %212 = arith.addf %211, %210 : vector<2x128xf32>
    %213 = vector.extract_strided_slice %212 {offsets = [0, 0], sizes = [2, 32], strides = [1, 1]} : vector<2x128xf32> to vector<2x32xf32>
    %214 = vector.extract_strided_slice %212 {offsets = [0, 32], sizes = [2, 32], strides = [1, 1]} : vector<2x128xf32> to vector<2x32xf32>
    %215 = vector.extract_strided_slice %205 {offsets = [0, 64], sizes = [2, 32], strides = [1, 1]} : vector<2x128xf32> to vector<2x32xf32>
    %216 = vector.extract_strided_slice %212 {offsets = [0, 96], sizes = [2, 32], strides = [1, 1]} : vector<2x128xf32> to vector<2x32xf32>
    %217 = arith.mulf %214, %177 : vector<2x32xf32>
    %218 = arith.mulf %213, %215 : vector<2x32xf32>
    %219 = arith.addf %217, %218 : vector<2x32xf32>
    %220 = math.tanh %219 : vector<2x32xf32>
    %221 = arith.mulf %216, %220 : vector<2x32xf32>
    %c10 = arith.constant 10 : index
    %c0_66 = arith.constant 0 : index
    %222 = vector.load %arg9[%c10, %c0_66] : memref<16x128xf32, #tpu.memory_space<vmem>>, vector<2x128xf32>
    %cst_67 = arith.constant dense<0.000000e+00> : vector<2x128xf32>
    %223 = tpu.matmul %199, %7, %cst_67 {dimension_numbers = #tpu.dot_dimension_numbers<[1], [0], [0], [1], [0, 0, 1, 1], [], []>} : vector<2x32xf32>, vector<32x128xf32>, vector<2x128xf32> -> vector<2x128xf32>
    %224 = arith.addf %222, %223 : vector<2x128xf32>
    %225 = math.tanh %224 : vector<2x128xf32>
    %cst_68 = arith.constant 5.000000e-01 : f32
    %226 = vector.broadcast %cst_68 : f32 to vector<2x128xf32>
    %227 = arith.mulf %226, %224 : vector<2x128xf32>
    %228 = math.tanh %227 : vector<2x128xf32>
    %cst_69 = arith.constant 5.000000e-01 : f32
    %229 = vector.broadcast %cst_69 : f32 to vector<2x128xf32>
    %230 = arith.mulf %229, %228 : vector<2x128xf32>
    %cst_70 = arith.constant 5.000000e-01 : f32
    %231 = vector.broadcast %cst_70 : f32 to vector<2x128xf32>
    %232 = arith.addf %231, %230 : vector<2x128xf32>
    %233 = vector.extract_strided_slice %232 {offsets = [0, 0], sizes = [2, 32], strides = [1, 1]} : vector<2x128xf32> to vector<2x32xf32>
    %234 = vector.extract_strided_slice %232 {offsets = [0, 32], sizes = [2, 32], strides = [1, 1]} : vector<2x128xf32> to vector<2x32xf32>
    %235 = vector.extract_strided_slice %225 {offsets = [0, 64], sizes = [2, 32], strides = [1, 1]} : vector<2x128xf32> to vector<2x32xf32>
    %236 = vector.extract_strided_slice %232 {offsets = [0, 96], sizes = [2, 32], strides = [1, 1]} : vector<2x128xf32> to vector<2x32xf32>
    %237 = arith.mulf %234, %197 : vector<2x32xf32>
    %238 = arith.mulf %233, %235 : vector<2x32xf32>
    %239 = arith.addf %237, %238 : vector<2x32xf32>
    %240 = math.tanh %239 : vector<2x32xf32>
    %241 = arith.mulf %236, %240 : vector<2x32xf32>
    %cst_71 = arith.constant dense<0.000000e+00> : vector<2x128xf32>
    %242 = tpu.matmul %241, %8, %cst_71 {dimension_numbers = #tpu.dot_dimension_numbers<[1], [0], [0], [1], [0, 0, 1, 1], [], []>} : vector<2x32xf32>, vector<32x128xf32>, vector<2x128xf32> -> vector<2x128xf32>
    %cst_72 = arith.constant dense<0.000000e+00> : vector<2x128xf32>
    %243 = tpu.matmul %221, %9, %cst_72 {dimension_numbers = #tpu.dot_dimension_numbers<[1], [0], [0], [1], [0, 0, 1, 1], [], []>} : vector<2x32xf32>, vector<32x128xf32>, vector<2x128xf32> -> vector<2x128xf32>
    %244 = arith.addf %242, %243 : vector<2x128xf32>
    %245 = vector.broadcast %10 : vector<1x128xf32> to vector<2x128xf32>
    %246 = arith.addf %244, %245 : vector<2x128xf32>
    %247 = math.tanh %246 : vector<2x128xf32>
    %cst_73 = arith.constant 5.000000e-01 : f32
    %248 = vector.broadcast %cst_73 : f32 to vector<2x128xf32>
    %249 = arith.mulf %248, %246 : vector<2x128xf32>
    %250 = math.tanh %249 : vector<2x128xf32>
    %cst_74 = arith.constant 5.000000e-01 : f32
    %251 = vector.broadcast %cst_74 : f32 to vector<2x128xf32>
    %252 = arith.mulf %251, %250 : vector<2x128xf32>
    %cst_75 = arith.constant 5.000000e-01 : f32
    %253 = vector.broadcast %cst_75 : f32 to vector<2x128xf32>
    %254 = arith.addf %253, %252 : vector<2x128xf32>
    %255 = vector.extract_strided_slice %254 {offsets = [0, 0], sizes = [2, 32], strides = [1, 1]} : vector<2x128xf32> to vector<2x32xf32>
    %256 = vector.extract_strided_slice %254 {offsets = [0, 32], sizes = [2, 32], strides = [1, 1]} : vector<2x128xf32> to vector<2x32xf32>
    %257 = vector.extract_strided_slice %247 {offsets = [0, 64], sizes = [2, 32], strides = [1, 1]} : vector<2x128xf32> to vector<2x32xf32>
    %258 = vector.extract_strided_slice %254 {offsets = [0, 96], sizes = [2, 32], strides = [1, 1]} : vector<2x128xf32> to vector<2x32xf32>
    %259 = arith.mulf %256, %219 : vector<2x32xf32>
    %260 = arith.mulf %255, %257 : vector<2x32xf32>
    %261 = arith.addf %259, %260 : vector<2x32xf32>
    %262 = math.tanh %261 : vector<2x32xf32>
    %263 = arith.mulf %258, %262 : vector<2x32xf32>
    %c12 = arith.constant 12 : index
    %c0_76 = arith.constant 0 : index
    %264 = vector.load %arg9[%c12, %c0_76] : memref<16x128xf32, #tpu.memory_space<vmem>>, vector<2x128xf32>
    %cst_77 = arith.constant dense<0.000000e+00> : vector<2x128xf32>
    %265 = tpu.matmul %241, %7, %cst_77 {dimension_numbers = #tpu.dot_dimension_numbers<[1], [0], [0], [1], [0, 0, 1, 1], [], []>} : vector<2x32xf32>, vector<32x128xf32>, vector<2x128xf32> -> vector<2x128xf32>
    %266 = arith.addf %264, %265 : vector<2x128xf32>
    %267 = math.tanh %266 : vector<2x128xf32>
    %cst_78 = arith.constant 5.000000e-01 : f32
    %268 = vector.broadcast %cst_78 : f32 to vector<2x128xf32>
    %269 = arith.mulf %268, %266 : vector<2x128xf32>
    %270 = math.tanh %269 : vector<2x128xf32>
    %cst_79 = arith.constant 5.000000e-01 : f32
    %271 = vector.broadcast %cst_79 : f32 to vector<2x128xf32>
    %272 = arith.mulf %271, %270 : vector<2x128xf32>
    %cst_80 = arith.constant 5.000000e-01 : f32
    %273 = vector.broadcast %cst_80 : f32 to vector<2x128xf32>
    %274 = arith.addf %273, %272 : vector<2x128xf32>
    %275 = vector.extract_strided_slice %274 {offsets = [0, 0], sizes = [2, 32], strides = [1, 1]} : vector<2x128xf32> to vector<2x32xf32>
    %276 = vector.extract_strided_slice %274 {offsets = [0, 32], sizes = [2, 32], strides = [1, 1]} : vector<2x128xf32> to vector<2x32xf32>
    %277 = vector.extract_strided_slice %267 {offsets = [0, 64], sizes = [2, 32], strides = [1, 1]} : vector<2x128xf32> to vector<2x32xf32>
    %278 = vector.extract_strided_slice %274 {offsets = [0, 96], sizes = [2, 32], strides = [1, 1]} : vector<2x128xf32> to vector<2x32xf32>
    %279 = arith.mulf %276, %239 : vector<2x32xf32>
    %280 = arith.mulf %275, %277 : vector<2x32xf32>
    %281 = arith.addf %279, %280 : vector<2x32xf32>
    %282 = math.tanh %281 : vector<2x32xf32>
    %283 = arith.mulf %278, %282 : vector<2x32xf32>
    %cst_81 = arith.constant dense<0.000000e+00> : vector<2x128xf32>
    %284 = tpu.matmul %283, %8, %cst_81 {dimension_numbers = #tpu.dot_dimension_numbers<[1], [0], [0], [1], [0, 0, 1, 1], [], []>} : vector<2x32xf32>, vector<32x128xf32>, vector<2x128xf32> -> vector<2x128xf32>
    %cst_82 = arith.constant dense<0.000000e+00> : vector<2x128xf32>
    %285 = tpu.matmul %263, %9, %cst_82 {dimension_numbers = #tpu.dot_dimension_numbers<[1], [0], [0], [1], [0, 0, 1, 1], [], []>} : vector<2x32xf32>, vector<32x128xf32>, vector<2x128xf32> -> vector<2x128xf32>
    %286 = arith.addf %284, %285 : vector<2x128xf32>
    %287 = vector.broadcast %10 : vector<1x128xf32> to vector<2x128xf32>
    %288 = arith.addf %286, %287 : vector<2x128xf32>
    %289 = math.tanh %288 : vector<2x128xf32>
    %cst_83 = arith.constant 5.000000e-01 : f32
    %290 = vector.broadcast %cst_83 : f32 to vector<2x128xf32>
    %291 = arith.mulf %290, %288 : vector<2x128xf32>
    %292 = math.tanh %291 : vector<2x128xf32>
    %cst_84 = arith.constant 5.000000e-01 : f32
    %293 = vector.broadcast %cst_84 : f32 to vector<2x128xf32>
    %294 = arith.mulf %293, %292 : vector<2x128xf32>
    %cst_85 = arith.constant 5.000000e-01 : f32
    %295 = vector.broadcast %cst_85 : f32 to vector<2x128xf32>
    %296 = arith.addf %295, %294 : vector<2x128xf32>
    %297 = vector.extract_strided_slice %296 {offsets = [0, 0], sizes = [2, 32], strides = [1, 1]} : vector<2x128xf32> to vector<2x32xf32>
    %298 = vector.extract_strided_slice %296 {offsets = [0, 32], sizes = [2, 32], strides = [1, 1]} : vector<2x128xf32> to vector<2x32xf32>
    %299 = vector.extract_strided_slice %289 {offsets = [0, 64], sizes = [2, 32], strides = [1, 1]} : vector<2x128xf32> to vector<2x32xf32>
    %300 = vector.extract_strided_slice %296 {offsets = [0, 96], sizes = [2, 32], strides = [1, 1]} : vector<2x128xf32> to vector<2x32xf32>
    %301 = arith.mulf %298, %261 : vector<2x32xf32>
    %302 = arith.mulf %297, %299 : vector<2x32xf32>
    %303 = arith.addf %301, %302 : vector<2x32xf32>
    %304 = math.tanh %303 : vector<2x32xf32>
    %305 = arith.mulf %300, %304 : vector<2x32xf32>
    %c14 = arith.constant 14 : index
    %c0_86 = arith.constant 0 : index
    %306 = vector.load %arg9[%c14, %c0_86] : memref<16x128xf32, #tpu.memory_space<vmem>>, vector<2x128xf32>
    %cst_87 = arith.constant dense<0.000000e+00> : vector<2x128xf32>
    %307 = tpu.matmul %283, %7, %cst_87 {dimension_numbers = #tpu.dot_dimension_numbers<[1], [0], [0], [1], [0, 0, 1, 1], [], []>} : vector<2x32xf32>, vector<32x128xf32>, vector<2x128xf32> -> vector<2x128xf32>
    %308 = arith.addf %306, %307 : vector<2x128xf32>
    %309 = math.tanh %308 : vector<2x128xf32>
    %cst_88 = arith.constant 5.000000e-01 : f32
    %310 = vector.broadcast %cst_88 : f32 to vector<2x128xf32>
    %311 = arith.mulf %310, %308 : vector<2x128xf32>
    %312 = math.tanh %311 : vector<2x128xf32>
    %cst_89 = arith.constant 5.000000e-01 : f32
    %313 = vector.broadcast %cst_89 : f32 to vector<2x128xf32>
    %314 = arith.mulf %313, %312 : vector<2x128xf32>
    %cst_90 = arith.constant 5.000000e-01 : f32
    %315 = vector.broadcast %cst_90 : f32 to vector<2x128xf32>
    %316 = arith.addf %315, %314 : vector<2x128xf32>
    %317 = vector.extract_strided_slice %316 {offsets = [0, 0], sizes = [2, 32], strides = [1, 1]} : vector<2x128xf32> to vector<2x32xf32>
    %318 = vector.extract_strided_slice %316 {offsets = [0, 32], sizes = [2, 32], strides = [1, 1]} : vector<2x128xf32> to vector<2x32xf32>
    %319 = vector.extract_strided_slice %309 {offsets = [0, 64], sizes = [2, 32], strides = [1, 1]} : vector<2x128xf32> to vector<2x32xf32>
    %320 = vector.extract_strided_slice %316 {offsets = [0, 96], sizes = [2, 32], strides = [1, 1]} : vector<2x128xf32> to vector<2x32xf32>
    %321 = arith.mulf %318, %281 : vector<2x32xf32>
    %322 = arith.mulf %317, %319 : vector<2x32xf32>
    %323 = arith.addf %321, %322 : vector<2x32xf32>
    %324 = math.tanh %323 : vector<2x32xf32>
    %325 = arith.mulf %320, %324 : vector<2x32xf32>
    %cst_91 = arith.constant dense<0.000000e+00> : vector<2x128xf32>
    %326 = tpu.matmul %325, %8, %cst_91 {dimension_numbers = #tpu.dot_dimension_numbers<[1], [0], [0], [1], [0, 0, 1, 1], [], []>} : vector<2x32xf32>, vector<32x128xf32>, vector<2x128xf32> -> vector<2x128xf32>
    %cst_92 = arith.constant dense<0.000000e+00> : vector<2x128xf32>
    %327 = tpu.matmul %305, %9, %cst_92 {dimension_numbers = #tpu.dot_dimension_numbers<[1], [0], [0], [1], [0, 0, 1, 1], [], []>} : vector<2x32xf32>, vector<32x128xf32>, vector<2x128xf32> -> vector<2x128xf32>
    %328 = arith.addf %326, %327 : vector<2x128xf32>
    %329 = vector.broadcast %10 : vector<1x128xf32> to vector<2x128xf32>
    %330 = arith.addf %328, %329 : vector<2x128xf32>
    %331 = math.tanh %330 : vector<2x128xf32>
    %cst_93 = arith.constant 5.000000e-01 : f32
    %332 = vector.broadcast %cst_93 : f32 to vector<2x128xf32>
    %333 = arith.mulf %332, %330 : vector<2x128xf32>
    %334 = math.tanh %333 : vector<2x128xf32>
    %cst_94 = arith.constant 5.000000e-01 : f32
    %335 = vector.broadcast %cst_94 : f32 to vector<2x128xf32>
    %336 = arith.mulf %335, %334 : vector<2x128xf32>
    %cst_95 = arith.constant 5.000000e-01 : f32
    %337 = vector.broadcast %cst_95 : f32 to vector<2x128xf32>
    %338 = arith.addf %337, %336 : vector<2x128xf32>
    %339 = vector.extract_strided_slice %338 {offsets = [0, 0], sizes = [2, 32], strides = [1, 1]} : vector<2x128xf32> to vector<2x32xf32>
    %340 = vector.extract_strided_slice %338 {offsets = [0, 32], sizes = [2, 32], strides = [1, 1]} : vector<2x128xf32> to vector<2x32xf32>
    %341 = vector.extract_strided_slice %331 {offsets = [0, 64], sizes = [2, 32], strides = [1, 1]} : vector<2x128xf32> to vector<2x32xf32>
    %342 = vector.extract_strided_slice %338 {offsets = [0, 96], sizes = [2, 32], strides = [1, 1]} : vector<2x128xf32> to vector<2x32xf32>
    %343 = arith.mulf %340, %303 : vector<2x32xf32>
    %344 = arith.mulf %339, %341 : vector<2x32xf32>
    %345 = arith.addf %343, %344 : vector<2x32xf32>
    %346 = math.tanh %345 : vector<2x32xf32>
    %347 = arith.mulf %342, %346 : vector<2x32xf32>
    %c0_96 = arith.constant 0 : index
    %c0_97 = arith.constant 0 : index
    %348 = vector.load %arg6[%c0_96, %c0_97] : memref<32x128xf32, #tpu.memory_space<vmem>>, vector<32x128xf32>
    %cst_98 = arith.constant dense<0.000000e+00> : vector<2x128xf32>
    %349 = tpu.matmul %347, %348, %cst_98 {dimension_numbers = #tpu.dot_dimension_numbers<[1], [0], [0], [1], [0, 0, 1, 1], [], []>} : vector<2x32xf32>, vector<32x128xf32>, vector<2x128xf32> -> vector<2x128xf32>
    %c0_99 = arith.constant 0 : index
    %c0_100 = arith.constant 0 : index
    %350 = vector.load %arg7[%c0_99, %c0_100] : memref<1x128xf32, #tpu.memory_space<vmem>>, vector<1x128xf32>
    %351 = vector.broadcast %350 : vector<1x128xf32> to vector<2x128xf32>
    %352 = arith.addf %349, %351 : vector<2x128xf32>
    %c0_101 = arith.constant 0 : index
    %c0_102 = arith.constant 0 : index
    %353 = vector.load %arg8[%c0_101, %c0_102] : memref<2x128xf32, #tpu.memory_space<vmem>>, vector<2x128xf32>
    tpu.vector_store %arg8[%c0_101, %c0_102], %352 {strides = array<i32>} : memref<2x128xf32, #tpu.memory_space<vmem>>, vector<2x128xf32>,
    return
  }
}

</mosaic_0001>

<bundles_post_ra>
// kernel: tpu_custom_call.1
= control target key start
LH: loop header
LB: loop body
LE: loop exit
PB: predicated region body
PF: predicated region fallthrough
CT: control target
= control target key end

     0   :  { %13 = vsyncpa [#allocation4], 0  ;;  %s3566_s0 = inlined_call_operand.vmem [shape: f32[16,8], index: 0, kind: input, shape index: {}]   ;;  %s3567_s1 = inlined_call_operand.hbm [shape: f32[8,128], index: 1, kind: input, shape index: {}]   ;;  %s3568_s2 = inlined_call_operand.hbm [shape: f32[32,128], index: 2, kind: input, shape index: {}]   ;;  %s3569_s3 = inlined_call_operand.vmem [shape: f32[1,128], index: 3, kind: input, shape index: {}]   ;;  %s3570_s4 = inlined_call_operand.hbm [shape: f32[64,128], index: 4, kind: input, shape index: {}]   ;;  %s3571_s5 = inlined_call_operand.vmem [shape: f32[1,128], index: 5, kind: input, shape index: {}]   ;;  %s3572_s6 = inlined_call_operand.vmem [shape: f32[32,128], index: 6, kind: input, shape index: {}]   ;;  %s3573_s7 = inlined_call_operand.vmem [shape: f32[1,128], index: 7, kind: input, shape index: {}]   ;;  %s3574_s8 = inlined_call_operand.hbm [shape: f32[2,128], index: 8, kind: output, shape index: {}]  }
   0x1   :  { %14 = vsyncpa [#allocation7], 0 }
   0x2   :  { %15 = vsyncpa [#allocation5], 0  ;;  %s3061_s27 = smov [#allocation6]  }
   0x3   :  { %s33_s28 = sshll.u32 %s3061_s27, 4  ;;  %s34_s28 = int_to_ptr.vmem [resolvable:$true] %s33_s28 }
   0x4   :  { %s2983_s29 = scalar_lea.vmem %s34_s28, 512  ;;  %p2988_p1 = scmp.lt.s32.totalorder %s34_s28, %s34_s28 }
   0x5   :  { %p2984_p0 = scmp.ne.s32.totalorder %s34_s28, %s2983_s29  ;;  %p2989_p2 = scmp.lt.s32.totalorder %s2983_s29, %s2983_s29 }
   0x7   :  { %p2990_p3 = por %p2989_p2, %p2988_p1 }
   0x9   :  { %p2991_p4 = pnand %p2990_p3, %p2984_p0 }
   0xb   :  { %2994 = shalt.err (!%p2991_p4)
}
   0xc   :  { %s3062_s30 = smov 128   ;;  %s3063_s9 = smov 8  }
   0xd   :  { %39 = dma.hbm_to_vmem [thread:$0]  %s3568_s2, 512, %s34_s28, [#allocation7], %s3062_s30, %s3062_s30, %s3063_s9  }
   0xe   :  { %s3064_s12 = smov [#allocation3]   ;;  %s3065_s14 = smov [#allocation8]  }
   0xf   :  { %s24_s13 = sshll.u32 %s3064_s12, 4  ;;  %s47_s15 = sshll.u32 %s3065_s14, 4  ;;  %s25_s13 = int_to_ptr.vmem [resolvable:$true] %s24_s13  ;;  %s48_s15 = int_to_ptr.vmem [resolvable:$true] %s47_s15 }
  0x10   :  { %s3003_s16 = scalar_lea.vmem %s25_s13, 128  ;;  %p3008_p6 = scmp.lt.s32.totalorder %s25_s13, %s25_s13 }
  0x11   :  { %p3004_p5 = scmp.ne.s32.totalorder %s25_s13, %s3003_s16  ;;  %p3009_p7 = scmp.lt.s32.totalorder %s3003_s16, %s3003_s16 }
  0x13   :  { %p3010_p8 = por %p3009_p7, %p3008_p6 }
  0x15   :  { %p3011_p9 = pnand %p3010_p8, %p3004_p5 }
  0x17   :  { %3014 = shalt.err (!%p3011_p9)
}
  0x18   :  { %27 = dma.hbm_to_vmem [thread:$0]  %s3567_s1, 128, %s25_s13, [#allocation4]  }
  0x19   :  { %s3023_s19 = scalar_lea.vmem %s48_s15, 1024  ;;  %p3028_p11 = scmp.lt.s32.totalorder %s48_s15, %s48_s15 }
  0x1a   :  { %p3024_p10 = scmp.ne.s32.totalorder %s48_s15, %s3023_s19  ;;  %p3029_p12 = scmp.lt.s32.totalorder %s3023_s19, %s3023_s19 }
  0x1c   :  { %p3030_p13 = por %p3029_p12, %p3028_p11 }
  0x1e   :  { %p3031_p0 = pnand %p3030_p13, %p3024_p10 }
  0x20   :  { %3034 = shalt.err (!%p3031_p0)
}
  0x21   :  { %53 = dma.hbm_to_vmem [thread:$0]  %s3570_s4, 1024, %s48_s15, [#allocation7], %s3062_s30, %s3062_s30, %s3063_s9  }
  0x22   :  { %3055 = dma.done.wait [#allocation4], 128  }
  0x23   :  { %3056 = vsyncadd [#allocation4], 4294967168 }
  0x24   :  { %3057 = dma.done.wait [#allocation7], 1536  }
  0x25   :  { %3058 = vsyncadd [#allocation7], 4294965760  ;;  %v3066_v0 = vmov 0.0   ;;  %vm3067_vm0 = vmmov 0   ;;  %vm79_vm1 = vcmask 64512   ;;  %v71_v1 = vld [vmem:[#allocation3] sm:$0xff] }
  0x26   :  { %2581 = vmatprep.subr.mxu1 %v3066_v0  ;;  %2589 = vmatprep.mubr.msk.f32.mxu1 %vm3067_vm0, %v3066_v0  ;;  %v69_v2 = vld [vmem:[%s3566_s0] sm:$0xff]  ;;  %v70_v3 = vld [vmem:[%s3566_s0 + $0x8] sm:$0xff]  ;;  %v3134_v4 = vld [vmem:[#allocation6 + $0x18] sm:$0xff]  ;;  %s3068_s24 = smov 64   ;;  %vm177_vm2 = vcmask 261120   ;;  %s3070_s16 = smov [#allocation9]  }
  0x27   :  { %2576 = vmatprep.subr.mxu0 %v71_v1  ;;  %2578 = vmatprep.mubr.msk.f32.mxu0 %vm79_vm1, %v69_v2  ;;  %v3136_v5 = vld [vmem:[#allocation6 + $0x10] sm:$0xff]  ;;  %v3140_v6 = vld [vmem:[#allocation6 + $0x8] sm:$0xff]  ;;  %v3145_v7 = vld [vmem:[#allocation6] sm:$0xff] }
  0x28   :  { %2577 = vmatpush3.msra.mxu0 %v71_v1  ;;  %2582 = vmatpush3.msra.mxu1 %v3134_v4  ;;  %v2420_v8 = vld [vmem:[%s3569_s3] ss:$0 sm:$0xff]  ;;  %s3069_s3 = smov 32   ;;  %v3164_v27 = vld [vmem:[#allocation8 + $0x38] sm:$0xff]  ;;  %v3166_v28 = vld [vmem:[#allocation8 + $0x30] sm:$0xff] }
  0x29   :  { %2579 = vmatmul.mubr.msk.f32.vlgmr.msra.gmra.mxu0 %vm79_vm1, %v70_v3  ;;  %2583 = vmatprep.subr.mxu1 %v3066_v0  ;;  %v3169_v29 = vld [vmem:[#allocation8 + $0x18] sm:$0xff]  ;;  %v3171_v30 = vld [vmem:[#allocation8 + $0x10] sm:$0xff]  ;;  %v3174_v31 = vld [vmem:[#allocation8 + $0x28] sm:$0xff] }
  0x2a   :  { %2584 = vmatpush3.msra.mxu1 %v3136_v5  ;;  %2592 = vmatprep.subr.mxu0 %v3066_v0  ;;  %v3179_v32 = vld [vmem:[#allocation8 + $0x8] sm:$0xff]  ;;  %v3182_v33 = vld [vmem:[#allocation8 + $0x20] sm:$0xff] }
  0x2b   :  { %2585 = vmatprep.subr.mxu1 %v3066_v0  ;;  %2600 = vmatprep.mubr.msk.f32.mxu0 %vm3067_vm0, %v3066_v0  ;;  %v3189_v34 = vld [vmem:[#allocation8] sm:$0xff]  ;;  %v3234_v41 = vld [vmem:[%s3571_s5] ss:$0 sm:$0xff] }
  0x2c   :  { %2586 = vmatpush3.msra.mxu1 %v3140_v6  ;;  %2593 = vmatpush3.msra.mxu0 %v3164_v27 }
  0x2d   :  { %2587 = vmatprep.subr.mxu1 %v3066_v0  ;;  %2594 = vmatprep.subr.mxu0 %v3066_v0 }
  0x2e   :  { %2588 = vmatpush3.msra.mxu1 %v3145_v7  ;;  %2595 = vmatpush3.msra.mxu0 %v3166_v28 }
  0x2f   :  { %2590 = vmatmul.mubr.f32.vlgmr.msra.gmra.mxu1 %v3066_v0  ;;  %2603 = vmatprep.subr.mxu1 %v3066_v0 }
  0x30   :  { %2611 = vmatprep.mubr.msk.f32.mxu1 %vm3067_vm0, %v3066_v0  ;;  %2604 = vmatpush3.msra.mxu1 %v3169_v29 }
  0x31   :  { %2605 = vmatprep.subr.mxu1 %v3066_v0  ;;  %2596 = vmatprep.subr.mxu0 %v3066_v0 }
  0x32   :  { %2606 = vmatpush3.msra.mxu1 %v3171_v30  ;;  %2597 = vmatpush3.msra.mxu0 %v3174_v31 }
  0x33   :  { %2607 = vmatprep.subr.mxu1 %v3066_v0  ;;  %2598 = vmatprep.subr.mxu0 %v3066_v0 }
  0x34   :  { %2608 = vmatpush3.msra.mxu1 %v3179_v32  ;;  %2599 = vmatpush3.msra.mxu0 %v3182_v33 }
  0x35   :  { %2609 = vmatprep.subr.mxu1 %v3066_v0  ;;  %2614 = vmatprep.subr.mxu0 %v3066_v0 }
  0x36   :  { %2601 = vmatmul.mubr.f32.vlgmr.msra.gmra.mxu0 %v3066_v0  ;;  %2610 = vmatpush3.msra.mxu1 %v3189_v34 }
  0x37   :  { %2615 = vmatpush3.msra.mxu0 %v3134_v4  ;;  %2622 = vmatprep.mubr.msk.f32.mxu0 %vm3067_vm0, %v3066_v0 }
  0x38   :  { %2616 = vmatprep.subr.mxu0 %v3066_v0  ;;  %2625 = vmatprep.subr.mxu1 %v3066_v0 }
  0x39   :  { %2617 = vmatpush3.msra.mxu0 %v3136_v5 }
  0x3a   :  { %2618 = vmatprep.subr.mxu0 %v3066_v0 }
  0x3b   :  { %2619 = vmatpush3.msra.mxu0 %v3140_v6 }
  0x3c   :  { %2620 = vmatprep.subr.mxu0 %v3066_v0 }
  0x3d   :  { %2621 = vmatpush3.msra.mxu0 %v3145_v7 }
  0x3e   :  { %2636 = vmatprep.subr.mxu0 %v3066_v0 }
  0xe9   :  { %v2580_v9 = vpop.f32.mrf.mxu0 }
  0xea   :  { %v158_v10 = vadd.f32 %v2580_v9, %v2420_v8 }
  0xeb   :  { %v152_v11 = vpop.f32.mrf.mxu0 }
  0xec   :  { %162 = vst [vmem:[#allocation2 + $0x8] sm:$0xff] %v158_v10  ;;  %v153_v12 = vadd.f32 %v2420_v8, %v152_v11 }
  0xee   :  { %161 = vst [vmem:[#allocation2] sm:$0xff] %v153_v12 }
  0xef   :  { %v247_v13 = vpop.f32.mrf.mxu1 }
  0xf1   :  { %v2591_v14 = vpop.f32.mrf.mxu1 }
  0xf5   :  { %v176_v15 = vld [vmem:[#allocation2] sm:$0x3]  ;;  %v448_v43 = vld [vmem:[#allocation2 + $0x2] sm:$0x3] }
  0xf6   :  { %v251_v16 = vadd.f32 %v247_v13, %v176_v15  ;;  %v340_v38 = vpop.f32.mrf.mxu0 }
  0xf8   :  { %2866 = vtanh.f32 %v251_v16  ;;  %v253_v18 = vmul.f32 0.5, %v251_v16  ;;  %v2602_v39 = vpop.f32.mrf.mxu0 }
  0xfa   :  { %2868 = vtanh.f32 %v253_v18 }
 0x105   :  { %v2867_v17 = vpop.eup %2866 }
 0x106   :  { %259 = vrot.lane.b32.xlu0 %v2867_v17, %s3068_s24 }
 0x107   :  { %v2869_v19 = vpop.eup %2868 }
 0x108   :  { %v255_v20 = vmul.f32 0.5, %v2869_v19 }
 0x10a   :  { %v256_v21 = vadd.f32 0.5, %v255_v20 }
 0x10c   :  { %v257_v24 = vmul.f32 0.0, %v256_v21 }
 0x178   :  { %v260_v22 = vpop.permute.xlu0 %259 }
 0x179   :  { %v262_v23 = vmul.f32 %v260_v22, %v256_v21 }
 0x17b   :  { %264 = vrot.lane.b32.xlu0 %v262_v23, %s3069_s3 }
 0x1ed   :  { %v265_v25 = vpop.permute.xlu0 %264 }
 0x1ee   :  { %v3161_v26 = vadd.f32 %v265_v25, %v257_v24  ;;  %v715_v25 = vld [vmem:[#allocation2 + $0x4] sm:$0x3] }
 0x1f0   :  { %2870 = vtanh.f32 %v3161_v26 }
 0x1fd   :  { %v2871_v35 = vpop.eup %2870 }
 0x1fe   :  { %270 = vrot.lane.b32.xlu1 %v2871_v35, %s3068_s24 }
 0x270   :  { %v271_v36 = vpop.permute.xlu1 %270 }
 0x271   :  { %v273_v37 = vmul.f32 %v271_v36, %v256_v21 }
 0x273   :  { %345 = vrot.lane.b32.xlu1 %v273_v37, %s3069_s3 }
 0x2e5   :  { %v346_v40 = vpop.permute.xlu1 %345 }
 0x2e6   :  { %2612 = vmatmul.mubr.msk.f32.vlgmr.msra.gmra.mxu1 %vm177_vm2, %v346_v40  ;;  %2623 = vmatmul.mubr.msk.f32.vlgmr.msra.gmra.mxu0 %vm177_vm2, %v346_v40 }
 0x2e7   :  { %2637 = vmatpush3.msra.mxu0 %v3169_v29  ;;  %2626 = vmatpush3.msra.mxu1 %v3164_v27 }
 0x2e8   :  { %2638 = vmatprep.subr.mxu0 %v3066_v0  ;;  %2627 = vmatprep.subr.mxu1 %v3066_v0 }
 0x2e9   :  { %2639 = vmatpush3.msra.mxu0 %v3171_v30  ;;  %2628 = vmatpush3.msra.mxu1 %v3166_v28 }
 0x2ea   :  { %2640 = vmatprep.subr.mxu0 %v3066_v0  ;;  %2629 = vmatprep.subr.mxu1 %v3066_v0 }
 0x2eb   :  { %2641 = vmatpush3.msra.mxu0 %v3179_v32  ;;  %2630 = vmatpush3.msra.mxu1 %v3174_v31 }
 0x2ec   :  { %2642 = vmatprep.subr.mxu0 %v3066_v0  ;;  %2644 = vmatprep.mubr.msk.f32.mxu0 %vm3067_vm0, %v3066_v0 }
 0x2ed   :  { %2643 = vmatpush3.msra.mxu0 %v3189_v34  ;;  %2631 = vmatprep.subr.mxu1 %v3066_v0 }
 0x2ee   :  { %2632 = vmatpush3.msra.mxu1 %v3182_v33  ;;  %2633 = vmatprep.mubr.msk.f32.mxu1 %vm3067_vm0, %v3066_v0 }
 0x2ef   :  { %2647 = vmatprep.subr.mxu1 %v3066_v0  ;;  %2658 = vmatprep.subr.mxu0 %v3066_v0 }
 0x3a6   :  { %v415_v42 = vpop.f32.mrf.mxu1  ;;  %v515_v44 = vpop.f32.mrf.mxu0 }
 0x3a7   :  { %v416_v45 = vadd.f32 %v415_v42, %v340_v38  ;;  %v519_v46 = vadd.f32 %v515_v44, %v448_v43 }
 0x3a8   :  { %v2613_v47 = vpop.f32.mrf.mxu1  ;;  %v2624_v48 = vpop.f32.mrf.mxu0 }
 0x3a9   :  { %v425_v49 = vadd.f32 %v3234_v41, %v416_v45  ;;  %2872 = vtanh.f32 %v519_v46  ;;  %v521_v52 = vmul.f32 0.5, %v519_v46 }
 0x3ab   :  { %2874 = vtanh.f32 %v425_v49  ;;  %v427_v53 = vmul.f32 0.5, %v425_v49 }
 0x3ac   :  { %2876 = vtanh.f32 %v521_v52 }
 0x3ad   :  { %2878 = vtanh.f32 %v427_v53 }
 0x3b6   :  { %v2873_v50 = vpop.eup %2872 }
 0x3b7   :  { %527 = vrot.lane.b32.xlu1 %v2873_v50, %s3068_s24 }
 0x3b8   :  { %v2875_v51 = vpop.eup %2874 }
 0x3b9   :  { %433 = vrot.lane.b32.xlu0 %v2875_v51, %s3068_s24  ;;  %v2877_v54 = vpop.eup %2876 }
 0x3ba   :  { %v2879_v55 = vpop.eup %2878  ;;  %v523_v56 = vmul.f32 0.5, %v2877_v54 }
 0x3bb   :  { %v429_v57 = vmul.f32 0.5, %v2879_v55 }
 0x3bc   :  { %v524_v58 = vadd.f32 0.5, %v523_v56 }
 0x3bd   :  { %v430_v61 = vadd.f32 0.5, %v429_v57 }
 0x3be   :  { %v525_v1 = vmul.f32 %v524_v58, %v3161_v26 }
 0x3bf   :  { %v431_v8 = vmul.f32 0.0, %v430_v61 }
 0x429   :  { %v528_v59 = vpop.permute.xlu1 %527 }
 0x42a   :  { %v530_v60 = vmul.f32 %v528_v59, %v524_v58 }
 0x42b   :  { %v434_v62 = vpop.permute.xlu0 %433 }
 0x42c   :  { %v436_v63 = vmul.f32 %v434_v62, %v430_v61  ;;  %532 = vrot.lane.b32.xlu1 %v530_v60, %s3069_s3 }
 0x42e   :  { %438 = vrot.lane.b32.xlu0 %v436_v63, %s3069_s3 }
 0x49e   :  { %v533_v2 = vpop.permute.xlu1 %532 }
 0x49f   :  { %v3242_v3 = vadd.f32 %v533_v2, %v525_v1 }
 0x4a0   :  { %v439_v9 = vpop.permute.xlu0 %438 }
 0x4a1   :  { %2880 = vtanh.f32 %v3242_v3  ;;  %v3245_v10 = vadd.f32 %v439_v9, %v431_v8 }
 0x4a3   :  { %2882 = vtanh.f32 %v3245_v10 }
 0x4ae   :  { %v2881_v11 = vpop.eup %2880 }
 0x4af   :  { %538 = vrot.lane.b32.xlu1 %v2881_v11, %s3068_s24 }
 0x4b0   :  { %v2883_v12 = vpop.eup %2882 }
 0x4b1   :  { %444 = vrot.lane.b32.xlu0 %v2883_v12, %s3068_s24  ;;  %v982_v12 = vld [vmem:[#allocation2 + $0x6] sm:$0x3] }
 0x521   :  { %v539_v13 = vpop.permute.xlu1 %538 }
 0x522   :  { %v541_v14 = vmul.f32 %v539_v13, %v524_v58 }
 0x523   :  { %v445_v15 = vpop.permute.xlu0 %444 }
 0x524   :  { %v447_v16 = vmul.f32 %v445_v15, %v430_v61  ;;  %618 = vrot.lane.b32.xlu1 %v541_v14, %s3069_s3 }
 0x526   :  { %543 = vrot.lane.b32.xlu0 %v447_v16, %s3069_s3 }
 0x596   :  { %v619_v17 = vpop.permute.xlu1 %618 }
 0x597   :  { %2645 = vmatmul.mubr.msk.f32.vlgmr.msra.gmra.mxu0 %vm177_vm2, %v619_v17 }
 0x598   :  { %v544_v18 = vpop.permute.xlu0 %543  ;;  %2659 = vmatpush3.msra.mxu0 %v3164_v27  ;;  %2666 = vmatprep.mubr.msk.f32.mxu0 %vm3067_vm0, %v3066_v0 }
 0x599   :  { %2634 = vmatmul.mubr.msk.f32.vlgmr.msra.gmra.mxu1 %vm177_vm2, %v544_v18  ;;  %2660 = vmatprep.subr.mxu0 %v3066_v0 }
 0x59a   :  { %2648 = vmatpush3.msra.mxu1 %v3134_v4  ;;  %2655 = vmatprep.mubr.msk.f32.mxu1 %vm3067_vm0, %v3066_v0 }
 0x59b   :  { %2649 = vmatprep.subr.mxu1 %v3066_v0  ;;  %2661 = vmatpush3.msra.mxu0 %v3166_v28 }
 0x59c   :  { %2650 = vmatpush3.msra.mxu1 %v3136_v5  ;;  %2662 = vmatprep.subr.mxu0 %v3066_v0 }
 0x59d   :  { %2651 = vmatprep.subr.mxu1 %v3066_v0  ;;  %2663 = vmatpush3.msra.mxu0 %v3174_v31 }
 0x59e   :  { %2652 = vmatpush3.msra.mxu1 %v3140_v6  ;;  %2664 = vmatprep.subr.mxu0 %v3066_v0 }
 0x59f   :  { %2653 = vmatprep.subr.mxu1 %v3066_v0  ;;  %2665 = vmatpush3.msra.mxu0 %v3182_v33 }
 0x5a0   :  { %2654 = vmatpush3.msra.mxu1 %v3145_v7  ;;  %2680 = vmatprep.subr.mxu0 %v3066_v0 }
 0x5a1   :  { %2656 = vmatmul.mubr.msk.f32.vlgmr.msra.gmra.mxu1 %vm177_vm2, %v619_v17  ;;  %2669 = vmatprep.subr.mxu1 %v3066_v0 }
 0x5a2   :  { %2670 = vmatpush3.msra.mxu1 %v3169_v29  ;;  %2677 = vmatprep.mubr.msk.f32.mxu1 %vm3067_vm0, %v3066_v0 }
 0x5a3   :  { %2671 = vmatprep.subr.mxu1 %v3066_v0 }
 0x5a4   :  { %2672 = vmatpush3.msra.mxu1 %v3171_v30 }
 0x5a5   :  { %2673 = vmatprep.subr.mxu1 %v3066_v0 }
 0x5a6   :  { %2674 = vmatpush3.msra.mxu1 %v3179_v32 }
 0x5a7   :  { %2675 = vmatprep.subr.mxu1 %v3066_v0 }
 0x5a8   :  { %2676 = vmatpush3.msra.mxu1 %v3189_v34 }
 0x5a9   :  { %2691 = vmatprep.subr.mxu1 %v3066_v0 }
 0x657   :  { %v688_v19 = vpop.f32.mrf.mxu0 }
 0x659   :  { %v613_v20 = vpop.f32.mrf.mxu1  ;;  %v2646_v21 = vpop.f32.mrf.mxu0 }
 0x65a   :  { %v689_v22 = vadd.f32 %v688_v19, %v613_v20 }
 0x65b   :  { %v2635_v23 = vpop.f32.mrf.mxu1 }
 0x65c   :  { %v692_v24 = vadd.f32 %v3234_v41, %v689_v22 }
 0x65e   :  { %2884 = vtanh.f32 %v692_v24  ;;  %v694_v39 = vmul.f32 0.5, %v692_v24 }
 0x661   :  { %v782_v26 = vpop.f32.mrf.mxu1 }
 0x662   :  { %v786_v35 = vadd.f32 %v782_v26, %v715_v25 }
 0x663   :  { %v2657_v36 = vpop.f32.mrf.mxu1 }
 0x664   :  { %2886 = vtanh.f32 %v786_v35  ;;  %v788_v40 = vmul.f32 0.5, %v786_v35 }
 0x665   :  { %2888 = vtanh.f32 %v694_v39 }
 0x666   :  { %2890 = vtanh.f32 %v788_v40 }
 0x66b   :  { %v2885_v37 = vpop.eup %2884 }
 0x66c   :  { %700 = vrot.lane.b32.xlu0 %v2885_v37, %s3068_s24 }
 0x671   :  { %v2887_v38 = vpop.eup %2886 }
 0x672   :  { %794 = vrot.lane.b32.xlu1 %v2887_v38, %s3068_s24  ;;  %v2889_v42 = vpop.eup %2888 }
 0x673   :  { %v696_v43 = vmul.f32 0.5, %v2889_v42  ;;  %v2891_v44 = vpop.eup %2890 }
 0x674   :  { %v790_v48 = vmul.f32 0.5, %v2891_v44 }
 0x675   :  { %v697_v45 = vadd.f32 0.5, %v696_v43 }
 0x676   :  { %v791_v49 = vadd.f32 0.5, %v790_v48 }
 0x677   :  { %v698_v52 = vmul.f32 %v697_v45, %v3245_v10 }
 0x678   :  { %v792_v55 = vmul.f32 %v791_v49, %v3242_v3 }
 0x6de   :  { %v701_v46 = vpop.permute.xlu0 %700 }
 0x6df   :  { %v703_v47 = vmul.f32 %v701_v46, %v697_v45 }
 0x6e1   :  { %705 = vrot.lane.b32.xlu0 %v703_v47, %s3069_s3 }
 0x6e4   :  { %v795_v50 = vpop.permute.xlu1 %794 }
 0x6e5   :  { %v797_v51 = vmul.f32 %v795_v50, %v791_v49 }
 0x6e7   :  { %799 = vrot.lane.b32.xlu1 %v797_v51, %s3069_s3 }
 0x753   :  { %v706_v53 = vpop.permute.xlu0 %705 }
 0x754   :  { %v3291_v54 = vadd.f32 %v706_v53, %v698_v52 }
 0x756   :  { %2892 = vtanh.f32 %v3291_v54 }
 0x759   :  { %v800_v56 = vpop.permute.xlu1 %799 }
 0x75a   :  { %v3295_v57 = vadd.f32 %v800_v56, %v792_v55 }
 0x75c   :  { %2894 = vtanh.f32 %v3295_v57 }
 0x763   :  { %v2893_v58 = vpop.eup %2892 }
 0x764   :  { %711 = vrot.lane.b32.xlu0 %v2893_v58, %s3068_s24 }
 0x769   :  { %v2895_v59 = vpop.eup %2894 }
 0x76a   :  { %805 = vrot.lane.b32.xlu1 %v2895_v59, %s3068_s24 }
 0x7d6   :  { %v712_v60 = vpop.permute.xlu0 %711 }
 0x7d7   :  { %v714_v61 = vmul.f32 %v712_v60, %v697_v45  ;;  %v1249_v60 = vld [vmem:[#allocation2 + $0x8] sm:$0x3] }
 0x7d9   :  { %810 = vrot.lane.b32.xlu0 %v714_v61, %s3069_s3 }
 0x7dc   :  { %v806_v62 = vpop.permute.xlu1 %805 }
 0x7dd   :  { %v808_v63 = vmul.f32 %v806_v62, %v791_v49 }
 0x7df   :  { %885 = vrot.lane.b32.xlu1 %v808_v63, %s3069_s3 }
 0x84b   :  { %v811_v1 = vpop.permute.xlu0 %810 }
 0x84c   :  { %2667 = vmatmul.mubr.msk.f32.vlgmr.msra.gmra.mxu0 %vm177_vm2, %v811_v1 }
 0x84d   :  { %2681 = vmatpush3.msra.mxu0 %v3134_v4  ;;  %2688 = vmatprep.mubr.msk.f32.mxu0 %vm3067_vm0, %v3066_v0 }
 0x84e   :  { %2682 = vmatprep.subr.mxu0 %v3066_v0 }
 0x84f   :  { %2683 = vmatpush3.msra.mxu0 %v3136_v5 }
 0x850   :  { %2684 = vmatprep.subr.mxu0 %v3066_v0 }
 0x851   :  { %2685 = vmatpush3.msra.mxu0 %v3140_v6  ;;  %v886_v2 = vpop.permute.xlu1 %885 }
 0x852   :  { %2678 = vmatmul.mubr.msk.f32.vlgmr.msra.gmra.mxu1 %vm177_vm2, %v886_v2  ;;  %2686 = vmatprep.subr.mxu0 %v3066_v0 }
 0x853   :  { %2687 = vmatpush3.msra.mxu0 %v3145_v7  ;;  %2692 = vmatpush3.msra.mxu1 %v3164_v27 }
 0x854   :  { %2689 = vmatmul.mubr.msk.f32.vlgmr.msra.gmra.mxu0 %vm177_vm2, %v886_v2  ;;  %2702 = vmatprep.subr.mxu0 %v3066_v0 }
 0x855   :  { %2693 = vmatprep.subr.mxu1 %v3066_v0  ;;  %2703 = vmatpush3.msra.mxu0 %v3169_v29 }
 0x856   :  { %2694 = vmatpush3.msra.mxu1 %v3166_v28  ;;  %2704 = vmatprep.subr.mxu0 %v3066_v0 }
 0x857   :  { %2695 = vmatprep.subr.mxu1 %v3066_v0  ;;  %2705 = vmatpush3.msra.mxu0 %v3171_v30 }
 0x858   :  { %2696 = vmatpush3.msra.mxu1 %v3174_v31  ;;  %2706 = vmatprep.subr.mxu0 %v3066_v0 }
 0x859   :  { %2697 = vmatprep.subr.mxu1 %v3066_v0  ;;  %2707 = vmatpush3.msra.mxu0 %v3179_v32 }
 0x85a   :  { %2698 = vmatpush3.msra.mxu1 %v3182_v33  ;;  %2708 = vmatprep.subr.mxu0 %v3066_v0 }
 0x85b   :  { %2709 = vmatpush3.msra.mxu0 %v3189_v34  ;;  %2710 = vmatprep.mubr.msk.f32.mxu0 %vm3067_vm0, %v3066_v0 }
 0x85c   :  { %2699 = vmatprep.mubr.msk.f32.mxu1 %vm3067_vm0, %v3066_v0  ;;  %2713 = vmatprep.subr.mxu1 %v3066_v0 }
 0x85d   :  { %2724 = vmatprep.subr.mxu0 %v3066_v0 }
 0x90c   :  { %v880_v3 = vpop.f32.mrf.mxu0 }
 0x90e   :  { %v2668_v8 = vpop.f32.mrf.mxu0 }
 0x912   :  { %v955_v9 = vpop.f32.mrf.mxu1 }
 0x913   :  { %v956_v10 = vadd.f32 %v955_v9, %v880_v3 }
 0x914   :  { %v2679_v11 = vpop.f32.mrf.mxu1  ;;  %v1049_v13 = vpop.f32.mrf.mxu0 }
 0x915   :  { %v959_v14 = vadd.f32 %v3234_v41, %v956_v10  ;;  %v1053_v15 = vadd.f32 %v1049_v13, %v982_v12 }
 0x916   :  { %v2690_v16 = vpop.f32.mrf.mxu0 }
 0x917   :  { %2896 = vtanh.f32 %v959_v14  ;;  %v961_v19 = vmul.f32 0.5, %v959_v14  ;;  %v1055_v20 = vmul.f32 0.5, %v1053_v15 }
 0x918   :  { %2898 = vtanh.f32 %v1053_v15 }
 0x919   :  { %2900 = vtanh.f32 %v961_v19 }
 0x91a   :  { %2902 = vtanh.f32 %v1055_v20 }
 0x924   :  { %v2897_v17 = vpop.eup %2896 }
 0x925   :  { %v2899_v18 = vpop.eup %2898  ;;  %967 = vrot.lane.b32.xlu0 %v2897_v17, %s3068_s24 }
 0x926   :  { %1061 = vrot.lane.b32.xlu1 %v2899_v18, %s3068_s24  ;;  %v2901_v21 = vpop.eup %2900 }
 0x927   :  { %v2903_v22 = vpop.eup %2902  ;;  %v963_v23 = vmul.f32 0.5, %v2901_v21 }
 0x928   :  { %v1057_v24 = vmul.f32 0.5, %v2903_v22 }
 0x929   :  { %v964_v25 = vadd.f32 0.5, %v963_v23 }
 0x92a   :  { %v1058_v26 = vadd.f32 0.5, %v1057_v24 }
 0x92b   :  { %v965_v39 = vmul.f32 %v964_v25, %v3291_v54 }
 0x92c   :  { %v1059_v40 = vmul.f32 %v1058_v26, %v3295_v57 }
 0x997   :  { %v968_v35 = vpop.permute.xlu0 %967 }
 0x998   :  { %v1062_v36 = vpop.permute.xlu1 %1061  ;;  %v970_v37 = vmul.f32 %v968_v35, %v964_v25 }
 0x999   :  { %v1064_v38 = vmul.f32 %v1062_v36, %v1058_v26 }
 0x99a   :  { %972 = vrot.lane.b32.xlu0 %v970_v37, %s3069_s3 }
 0x99b   :  { %1066 = vrot.lane.b32.xlu1 %v1064_v38, %s3069_s3 }
 0xa0c   :  { %v973_v42 = vpop.permute.xlu0 %972 }
 0xa0d   :  { %v1067_v43 = vpop.permute.xlu1 %1066  ;;  %v3342_v44 = vadd.f32 %v973_v42, %v965_v39 }
 0xa0e   :  { %v3344_v45 = vadd.f32 %v1067_v43, %v1059_v40 }
 0xa0f   :  { %2904 = vtanh.f32 %v3342_v44 }
 0xa10   :  { %2906 = vtanh.f32 %v3344_v45 }
 0xa1c   :  { %v2905_v46 = vpop.eup %2904 }
 0xa1d   :  { %v2907_v47 = vpop.eup %2906  ;;  %978 = vrot.lane.b32.xlu0 %v2905_v46, %s3068_s24 }
 0xa1e   :  { %1072 = vrot.lane.b32.xlu1 %v2907_v47, %s3068_s24 }
 0xa8f   :  { %v979_v48 = vpop.permute.xlu0 %978 }
 0xa90   :  { %v1073_v49 = vpop.permute.xlu1 %1072  ;;  %v981_v50 = vmul.f32 %v979_v48, %v964_v25  ;;  %v1516_v48 = vld [vmem:[#allocation2 + $0xa] sm:$0x3] }
 0xa91   :  { %v1075_v51 = vmul.f32 %v1073_v49, %v1058_v26 }
 0xa92   :  { %1077 = vrot.lane.b32.xlu0 %v981_v50, %s3069_s3 }
 0xa93   :  { %1152 = vrot.lane.b32.xlu1 %v1075_v51, %s3069_s3 }
 0xb04   :  { %v1078_v52 = vpop.permute.xlu0 %1077 }
 0xb05   :  { %v1153_v53 = vpop.permute.xlu1 %1152  ;;  %2700 = vmatmul.mubr.msk.f32.vlgmr.msra.gmra.mxu1 %vm177_vm2, %v1078_v52 }
 0xb06   :  { %2711 = vmatmul.mubr.msk.f32.vlgmr.msra.gmra.mxu0 %vm177_vm2, %v1153_v53  ;;  %2714 = vmatpush3.msra.mxu1 %v3134_v4 }
 0xb07   :  { %2715 = vmatprep.subr.mxu1 %v3066_v0  ;;  %2721 = vmatprep.mubr.msk.f32.mxu1 %vm3067_vm0, %v3066_v0 }
 0xb08   :  { %2716 = vmatpush3.msra.mxu1 %v3136_v5  ;;  %2725 = vmatpush3.msra.mxu0 %v3164_v27 }
 0xb09   :  { %2717 = vmatprep.subr.mxu1 %v3066_v0  ;;  %2726 = vmatprep.subr.mxu0 %v3066_v0 }
 0xb0a   :  { %2718 = vmatpush3.msra.mxu1 %v3140_v6  ;;  %2727 = vmatpush3.msra.mxu0 %v3166_v28 }
 0xb0b   :  { %2719 = vmatprep.subr.mxu1 %v3066_v0  ;;  %2728 = vmatprep.subr.mxu0 %v3066_v0 }
 0xb0c   :  { %2720 = vmatpush3.msra.mxu1 %v3145_v7  ;;  %2729 = vmatpush3.msra.mxu0 %v3174_v31 }
 0xb0d   :  { %2722 = vmatmul.mubr.msk.f32.vlgmr.msra.gmra.mxu1 %vm177_vm2, %v1153_v53  ;;  %2730 = vmatprep.subr.mxu0 %v3066_v0 }
 0xb0e   :  { %2735 = vmatprep.subr.mxu1 %v3066_v0  ;;  %2731 = vmatpush3.msra.mxu0 %v3182_v33 }
 0xb0f   :  { %2736 = vmatpush3.msra.mxu1 %v3169_v29  ;;  %2732 = vmatprep.mubr.msk.f32.mxu0 %vm3067_vm0, %v3066_v0 }
 0xb10   :  { %2737 = vmatprep.subr.mxu1 %v3066_v0  ;;  %2746 = vmatprep.subr.mxu0 %v3066_v0 }
 0xb11   :  { %2738 = vmatpush3.msra.mxu1 %v3171_v30  ;;  %2743 = vmatprep.mubr.msk.f32.mxu1 %vm3067_vm0, %v3066_v0 }
 0xb12   :  { %2739 = vmatprep.subr.mxu1 %v3066_v0 }
 0xb13   :  { %2740 = vmatpush3.msra.mxu1 %v3179_v32 }
 0xb14   :  { %2741 = vmatprep.subr.mxu1 %v3066_v0 }
 0xb15   :  { %2742 = vmatpush3.msra.mxu1 %v3189_v34 }
 0xb16   :  { %2757 = vmatprep.subr.mxu1 %v3066_v0 }
 0xbc5   :  { %v1147_v54 = vpop.f32.mrf.mxu1 }
 0xbc6   :  { %v1222_v55 = vpop.f32.mrf.mxu0 }
 0xbc7   :  { %v1223_v56 = vadd.f32 %v1222_v55, %v1147_v54  ;;  %v2701_v57 = vpop.f32.mrf.mxu1 }
 0xbc8   :  { %v2712_v58 = vpop.f32.mrf.mxu0 }
 0xbc9   :  { %v1226_v59 = vadd.f32 %v3234_v41, %v1223_v56 }
 0xbcb   :  { %2908 = vtanh.f32 %v1226_v59  ;;  %v1228_v3 = vmul.f32 0.5, %v1226_v59 }
 0xbcd   :  { %v1316_v61 = vpop.f32.mrf.mxu1 }
 0xbce   :  { %v1320_v62 = vadd.f32 %v1316_v61, %v1249_v60 }
 0xbcf   :  { %v2723_v63 = vpop.f32.mrf.mxu1 }
 0xbd0   :  { %2910 = vtanh.f32 %v1320_v62  ;;  %v1322_v8 = vmul.f32 0.5, %v1320_v62 }
 0xbd1   :  { %2912 = vtanh.f32 %v1228_v3 }
 0xbd2   :  { %2914 = vtanh.f32 %v1322_v8 }
 0xbd8   :  { %v2909_v1 = vpop.eup %2908 }
 0xbd9   :  { %1234 = vrot.lane.b32.xlu0 %v2909_v1, %s3068_s24 }
 0xbdd   :  { %v2911_v2 = vpop.eup %2910 }
 0xbde   :  { %1328 = vrot.lane.b32.xlu1 %v2911_v2, %s3068_s24  ;;  %v2913_v9 = vpop.eup %2912 }
 0xbdf   :  { %v1230_v10 = vmul.f32 0.5, %v2913_v9  ;;  %v2915_v11 = vpop.eup %2914 }
 0xbe0   :  { %v1324_v14 = vmul.f32 0.5, %v2915_v11 }
 0xbe1   :  { %v1231_v12 = vadd.f32 0.5, %v1230_v10 }
 0xbe2   :  { %v1325_v16 = vadd.f32 0.5, %v1324_v14 }
 0xbe3   :  { %v1232_v19 = vmul.f32 %v1231_v12, %v3342_v44 }
 0xbe4   :  { %v1326_v22 = vmul.f32 %v1325_v16, %v3344_v45 }
 0xc4b   :  { %v1235_v13 = vpop.permute.xlu0 %1234 }
 0xc4c   :  { %v1237_v15 = vmul.f32 %v1235_v13, %v1231_v12 }
 0xc4e   :  { %1239 = vrot.lane.b32.xlu0 %v1237_v15, %s3069_s3 }
 0xc50   :  { %v1329_v17 = vpop.permute.xlu1 %1328 }
 0xc51   :  { %v1331_v18 = vmul.f32 %v1329_v17, %v1325_v16 }
 0xc53   :  { %1333 = vrot.lane.b32.xlu1 %v1331_v18, %s3069_s3 }
 0xcc0   :  { %v1240_v20 = vpop.permute.xlu0 %1239 }
 0xcc1   :  { %v3391_v21 = vadd.f32 %v1240_v20, %v1232_v19 }
 0xcc3   :  { %2916 = vtanh.f32 %v3391_v21 }
 0xcc5   :  { %v1334_v23 = vpop.permute.xlu1 %1333 }
 0xcc6   :  { %v3395_v24 = vadd.f32 %v1334_v23, %v1326_v22 }
 0xcc8   :  { %2918 = vtanh.f32 %v3395_v24 }
 0xcd0   :  { %v2917_v25 = vpop.eup %2916 }
 0xcd1   :  { %1245 = vrot.lane.b32.xlu0 %v2917_v25, %s3068_s24 }
 0xcd5   :  { %v2919_v26 = vpop.eup %2918 }
 0xcd6   :  { %1339 = vrot.lane.b32.xlu1 %v2919_v26, %s3068_s24 }
 0xd43   :  { %v1246_v35 = vpop.permute.xlu0 %1245 }
 0xd44   :  { %v1248_v36 = vmul.f32 %v1246_v35, %v1231_v12 }
 0xd46   :  { %1344 = vrot.lane.b32.xlu0 %v1248_v36, %s3069_s3 }
 0xd48   :  { %v1340_v37 = vpop.permute.xlu1 %1339 }
 0xd49   :  { %v1342_v38 = vmul.f32 %v1340_v37, %v1325_v16 }
 0xd4b   :  { %1419 = vrot.lane.b32.xlu1 %v1342_v38, %s3069_s3 }
 0xdb8   :  { %v1345_v39 = vpop.permute.xlu0 %1344 }
 0xdb9   :  { %2733 = vmatmul.mubr.msk.f32.vlgmr.msra.gmra.mxu0 %vm177_vm2, %v1345_v39 }
 0xdba   :  { %2747 = vmatpush3.msra.mxu0 %v3134_v4  ;;  %2754 = vmatprep.mubr.msk.f32.mxu0 %vm3067_vm0, %v3066_v0 }
 0xdbb   :  { %2748 = vmatprep.subr.mxu0 %v3066_v0 }
 0xdbc   :  { %2749 = vmatpush3.msra.mxu0 %v3136_v5 }
 0xdbd   :  { %2750 = vmatprep.subr.mxu0 %v3066_v0  ;;  %v1420_v40 = vpop.permute.xlu1 %1419 }
 0xdbe   :  { %2751 = vmatpush3.msra.mxu0 %v3140_v6  ;;  %2744 = vmatmul.mubr.msk.f32.vlgmr.msra.gmra.mxu1 %vm177_vm2, %v1420_v40 }
 0xdbf   :  { %2752 = vmatprep.subr.mxu0 %v3066_v0  ;;  %2758 = vmatpush3.msra.mxu1 %v3164_v27 }
 0xdc0   :  { %2753 = vmatpush3.msra.mxu0 %v3145_v7  ;;  %2759 = vmatprep.subr.mxu1 %v3066_v0 }
 0xdc1   :  { %2755 = vmatmul.mubr.msk.f32.vlgmr.msra.gmra.mxu0 %vm177_vm2, %v1420_v40  ;;  %2768 = vmatprep.subr.mxu0 %v3066_v0 }
 0xdc2   :  { %2769 = vmatpush3.msra.mxu0 %v3169_v29  ;;  %2760 = vmatpush3.msra.mxu1 %v3166_v28 }
 0xdc3   :  { %2770 = vmatprep.subr.mxu0 %v3066_v0  ;;  %2761 = vmatprep.subr.mxu1 %v3066_v0 }
 0xdc4   :  { %2771 = vmatpush3.msra.mxu0 %v3171_v30  ;;  %2762 = vmatpush3.msra.mxu1 %v3174_v31 }
 0xdc5   :  { %2772 = vmatprep.subr.mxu0 %v3066_v0  ;;  %2763 = vmatprep.subr.mxu1 %v3066_v0 }
 0xdc6   :  { %2773 = vmatpush3.msra.mxu0 %v3179_v32  ;;  %2764 = vmatpush3.msra.mxu1 %v3182_v33 }
 0xdc7   :  { %2774 = vmatprep.subr.mxu0 %v3066_v0  ;;  %2776 = vmatprep.mubr.msk.f32.mxu0 %vm3067_vm0, %v3066_v0 }
 0xdc8   :  { %2775 = vmatpush3.msra.mxu0 %v3189_v34  ;;  %2765 = vmatprep.mubr.msk.f32.mxu1 %vm3067_vm0, %v3066_v0 }
 0xdc9   :  { %2779 = vmatprep.subr.mxu1 %v3066_v0  ;;  %2790 = vmatprep.subr.mxu0 %v3066_v0 }
 0xe79   :  { %v1414_v42 = vpop.f32.mrf.mxu0 }
 0xe7b   :  { %v2734_v43 = vpop.f32.mrf.mxu0 }
 0xe7e   :  { %v1489_v44 = vpop.f32.mrf.mxu1 }
 0xe7f   :  { %v1490_v45 = vadd.f32 %v1489_v44, %v1414_v42 }
 0xe80   :  { %v2745_v46 = vpop.f32.mrf.mxu1 }
 0xe81   :  { %v1493_v47 = vadd.f32 %v3234_v41, %v1490_v45  ;;  %v1583_v49 = vpop.f32.mrf.mxu0 }
 0xe82   :  { %v1587_v50 = vadd.f32 %v1583_v49, %v1516_v48 }
 0xe83   :  { %2920 = vtanh.f32 %v1493_v47  ;;  %v2756_v51 = vpop.f32.mrf.mxu0  ;;  %v1495_v54 = vmul.f32 0.5, %v1493_v47 }
 0xe84   :  { %2922 = vtanh.f32 %v1587_v50  ;;  %v1589_v55 = vmul.f32 0.5, %v1587_v50 }
 0xe85   :  { %2924 = vtanh.f32 %v1495_v54 }
 0xe86   :  { %2926 = vtanh.f32 %v1589_v55  ;;  %v2962_v55 = vld [vmem:[#allocation6 + $0x18] sm:$0xff] }
 0xe90   :  { %v2921_v52 = vpop.eup %2920 }
 0xe91   :  { %v2923_v53 = vpop.eup %2922  ;;  %1501 = vrot.lane.b32.xlu0 %v2921_v52, %s3068_s24 }
 0xe92   :  { %1595 = vrot.lane.b32.xlu1 %v2923_v53, %s3068_s24  ;;  %v2925_v56 = vpop.eup %2924 }
 0xe93   :  { %v2927_v57 = vpop.eup %2926  ;;  %v1497_v58 = vmul.f32 0.5, %v2925_v56  ;;  %v2963_v56 = vld [vmem:[#allocation6 + $0x10] sm:$0xff] }
 0xe94   :  { %v1591_v59 = vmul.f32 0.5, %v2927_v57 }
 0xe95   :  { %v1498_v60 = vadd.f32 0.5, %v1497_v58  ;;  %v2964_v58 = vld [vmem:[#allocation6 + $0x8] sm:$0xff] }
 0xe96   :  { %v1592_v61 = vadd.f32 0.5, %v1591_v59  ;;  %v2965_v59 = vld [vmem:[#allocation8 + $0x38] sm:$0xff] }
 0xe97   :  { %v1499_v3 = vmul.f32 %v1498_v60, %v3391_v21 }
 0xe98   :  { %v1593_v8 = vmul.f32 %v1592_v61, %v3395_v24 }
 0xf03   :  { %v1502_v62 = vpop.permute.xlu0 %1501 }
 0xf04   :  { %v1596_v63 = vpop.permute.xlu1 %1595  ;;  %v1504_v1 = vmul.f32 %v1502_v62, %v1498_v60  ;;  %v2968_v62 = vld [vmem:[#allocation8 + $0x30] sm:$0xff] }
 0xf05   :  { %v1598_v2 = vmul.f32 %v1596_v63, %v1592_v61  ;;  %v2969_v63 = vld [vmem:[#allocation8 + $0x10] sm:$0xff] }
 0xf06   :  { %1506 = vrot.lane.b32.xlu0 %v1504_v1, %s3069_s3  ;;  %v2970_v1 = vld [vmem:[#allocation8 + $0x28] sm:$0xff] }
 0xf07   :  { %1600 = vrot.lane.b32.xlu1 %v1598_v2, %s3069_s3  ;;  %v2971_v2 = vld [vmem:[#allocation8 + $0x8] sm:$0xff] }
 0xf78   :  { %v1507_v9 = vpop.permute.xlu0 %1506 }
 0xf79   :  { %v1601_v10 = vpop.permute.xlu1 %1600  ;;  %v3442_v11 = vadd.f32 %v1507_v9, %v1499_v3  ;;  %v2972_v3 = vld [vmem:[#allocation8 + $0x20] sm:$0xff] }
 0xf7a   :  { %v3444_v12 = vadd.f32 %v1601_v10, %v1593_v8  ;;  %v2973_v8 = vld [vmem:[#allocation8] sm:$0xff] }
 0xf7b   :  { %2928 = vtanh.f32 %v3442_v11 }
 0xf7c   :  { %2930 = vtanh.f32 %v3444_v12 }
 0xf88   :  { %v2929_v13 = vpop.eup %2928 }
 0xf89   :  { %v2931_v14 = vpop.eup %2930  ;;  %1512 = vrot.lane.b32.xlu0 %v2929_v13, %s3068_s24 }
 0xf8a   :  { %1606 = vrot.lane.b32.xlu1 %v2931_v14, %s3068_s24 }
 0xffb   :  { %v1513_v15 = vpop.permute.xlu0 %1512 }
 0xffc   :  { %v1607_v16 = vpop.permute.xlu1 %1606  ;;  %v1515_v17 = vmul.f32 %v1513_v15, %v1498_v60  ;;  %v2966_v60 = vld [vmem:[#allocation6] sm:$0xff]  ;;  %v2050_v15 = vld [vmem:[#allocation2 + $0xe] sm:$0x3] }
 0xffd   :  { %v1609_v18 = vmul.f32 %v1607_v16, %v1592_v61  ;;  %v2967_v61 = vld [vmem:[#allocation8 + $0x18] sm:$0xff] }
 0xffe   :  { %1611 = vrot.lane.b32.xlu0 %v1515_v17, %s3069_s3 }
 0xfff   :  { %1686 = vrot.lane.b32.xlu1 %v1609_v18, %s3069_s3 }
0x1070   :  { %v1612_v19 = vpop.permute.xlu0 %1611 }
0x1071   :  { %v1687_v20 = vpop.permute.xlu1 %1686  ;;  %2766 = vmatmul.mubr.msk.f32.vlgmr.msra.gmra.mxu1 %vm177_vm2, %v1612_v19 }
0x1072   :  { %2777 = vmatmul.mubr.msk.f32.vlgmr.msra.gmra.mxu0 %vm177_vm2, %v1687_v20  ;;  %2780 = vmatpush3.msra.mxu1 %v3134_v4 }
0x1073   :  { %2781 = vmatprep.subr.mxu1 %v3066_v0  ;;  %2787 = vmatprep.mubr.msk.f32.mxu1 %vm3067_vm0, %v3066_v0 }
0x1074   :  { %2782 = vmatpush3.msra.mxu1 %v3136_v5  ;;  %2791 = vmatpush3.msra.mxu0 %v3164_v27 }
0x1075   :  { %2783 = vmatprep.subr.mxu1 %v3066_v0  ;;  %2792 = vmatprep.subr.mxu0 %v3066_v0 }
0x1076   :  { %2784 = vmatpush3.msra.mxu1 %v3140_v6  ;;  %2793 = vmatpush3.msra.mxu0 %v3166_v28 }
0x1077   :  { %2785 = vmatprep.subr.mxu1 %v3066_v0  ;;  %2794 = vmatprep.subr.mxu0 %v3066_v0 }
0x1078   :  { %2786 = vmatpush3.msra.mxu1 %v3145_v7  ;;  %2795 = vmatpush3.msra.mxu0 %v3174_v31 }
0x1079   :  { %2788 = vmatmul.mubr.msk.f32.vlgmr.msra.gmra.mxu1 %vm177_vm2, %v1687_v20  ;;  %2796 = vmatprep.subr.mxu0 %v3066_v0 }
0x107a   :  { %2801 = vmatprep.subr.mxu1 %v3066_v0  ;;  %2797 = vmatpush3.msra.mxu0 %v3182_v33 }
0x107b   :  { %2802 = vmatpush3.msra.mxu1 %v3169_v29  ;;  %2798 = vmatprep.mubr.msk.f32.mxu0 %vm3067_vm0, %v3066_v0  ;;  %v1783_v29 = vld [vmem:[#allocation2 + $0xc] sm:$0x3] }
0x107c   :  { %2803 = vmatprep.subr.mxu1 %v3066_v0  ;;  %2812 = vmatprep.subr.mxu0 %v3066_v0 }
0x107d   :  { %2804 = vmatpush3.msra.mxu1 %v3171_v30  ;;  %2809 = vmatprep.mubr.msk.f32.mxu1 %vm3067_vm0, %v3066_v0 }
0x107e   :  { %2805 = vmatprep.subr.mxu1 %v3066_v0 }
0x107f   :  { %2806 = vmatpush3.msra.mxu1 %v3179_v32 }
0x1080   :  { %2807 = vmatprep.subr.mxu1 %v3066_v0 }
0x1081   :  { %2808 = vmatpush3.msra.mxu1 %v3189_v34 }
0x1082   :  { %2823 = vmatprep.subr.mxu1 %v3066_v0 }
0x1131   :  { %v1681_v4 = vpop.f32.mrf.mxu1 }
0x1132   :  { %v1756_v5 = vpop.f32.mrf.mxu0 }
0x1133   :  { %v1757_v6 = vadd.f32 %v1756_v5, %v1681_v4  ;;  %v2767_v7 = vpop.f32.mrf.mxu1 }
0x1134   :  { %v2778_v27 = vpop.f32.mrf.mxu0 }
0x1135   :  { %v1760_v28 = vadd.f32 %v3234_v41, %v1757_v6 }
0x1137   :  { %2932 = vtanh.f32 %v1760_v28  ;;  %v1762_v34 = vmul.f32 0.5, %v1760_v28 }
0x1139   :  { %v1850_v30 = vpop.f32.mrf.mxu1 }
0x113a   :  { %v1854_v31 = vadd.f32 %v1850_v30, %v1783_v29 }
0x113b   :  { %v2789_v33 = vpop.f32.mrf.mxu1 }
0x113c   :  { %2934 = vtanh.f32 %v1854_v31  ;;  %v1856_v22 = vmul.f32 0.5, %v1854_v31 }
0x113d   :  { %2936 = vtanh.f32 %v1762_v34 }
0x113e   :  { %2938 = vtanh.f32 %v1856_v22 }
0x1144   :  { %v2933_v32 = vpop.eup %2932 }
0x1145   :  { %1768 = vrot.lane.b32.xlu0 %v2933_v32, %s3068_s24 }
0x1149   :  { %v2935_v21 = vpop.eup %2934 }
0x114a   :  { %1862 = vrot.lane.b32.xlu1 %v2935_v21, %s3068_s24  ;;  %v2937_v23 = vpop.eup %2936 }
0x114b   :  { %v1764_v24 = vmul.f32 0.5, %v2937_v23  ;;  %v2939_v25 = vpop.eup %2938 }
0x114c   :  { %v1858_v36 = vmul.f32 0.5, %v2939_v25 }
0x114d   :  { %v1765_v26 = vadd.f32 0.5, %v1764_v24 }
0x114e   :  { %v1859_v38 = vadd.f32 0.5, %v1858_v36 }
0x114f   :  { %v1766_v42 = vmul.f32 %v1765_v26, %v3442_v11 }
0x1150   :  { %v1860_v45 = vmul.f32 %v1859_v38, %v3444_v12 }
0x11b7   :  { %v1769_v35 = vpop.permute.xlu0 %1768 }
0x11b8   :  { %v1771_v37 = vmul.f32 %v1769_v35, %v1765_v26 }
0x11ba   :  { %1773 = vrot.lane.b32.xlu0 %v1771_v37, %s3069_s3 }
0x11bc   :  { %v1863_v39 = vpop.permute.xlu1 %1862 }
0x11bd   :  { %v1865_v40 = vmul.f32 %v1863_v39, %v1859_v38 }
0x11bf   :  { %1867 = vrot.lane.b32.xlu1 %v1865_v40, %s3069_s3 }
0x122c   :  { %v1774_v43 = vpop.permute.xlu0 %1773 }
0x122d   :  { %v3491_v44 = vadd.f32 %v1774_v43, %v1766_v42 }
0x122f   :  { %2940 = vtanh.f32 %v3491_v44 }
0x1231   :  { %v1868_v46 = vpop.permute.xlu1 %1867 }
0x1232   :  { %v3495_v47 = vadd.f32 %v1868_v46, %v1860_v45 }
0x1234   :  { %2942 = vtanh.f32 %v3495_v47 }
0x123c   :  { %v2941_v48 = vpop.eup %2940 }
0x123d   :  { %1779 = vrot.lane.b32.xlu0 %v2941_v48, %s3068_s24  ;;  %v2974_v48 = vld [vmem:[%s3571_s5] ss:$0 sm:$0xff] }
0x1241   :  { %v2943_v49 = vpop.eup %2942 }
0x1242   :  { %1873 = vrot.lane.b32.xlu1 %v2943_v49, %s3068_s24 }
0x12af   :  { %v1780_v50 = vpop.permute.xlu0 %1779 }
0x12b0   :  { %v1782_v51 = vmul.f32 %v1780_v50, %v1765_v26 }
0x12b2   :  { %1878 = vrot.lane.b32.xlu0 %v1782_v51, %s3069_s3 }
0x12b4   :  { %v1874_v52 = vpop.permute.xlu1 %1873 }
0x12b5   :  { %v1876_v53 = vmul.f32 %v1874_v52, %v1859_v38 }
0x12b7   :  { %1953 = vrot.lane.b32.xlu1 %v1876_v53, %s3069_s3 }
0x1324   :  { %v1879_v54 = vpop.permute.xlu0 %1878 }
0x1325   :  { %2799 = vmatmul.mubr.msk.f32.vlgmr.msra.gmra.mxu0 %vm177_vm2, %v1879_v54 }
0x1326   :  { %2813 = vmatpush3.msra.mxu0 %v2962_v55  ;;  %2820 = vmatprep.mubr.msk.f32.mxu0 %vm3067_vm0, %v3066_v0 }
0x1327   :  { %2814 = vmatprep.subr.mxu0 %v3066_v0 }
0x1328   :  { %2815 = vmatpush3.msra.mxu0 %v2963_v56 }
0x1329   :  { %2816 = vmatprep.subr.mxu0 %v3066_v0  ;;  %v1954_v57 = vpop.permute.xlu1 %1953 }
0x132a   :  { %2817 = vmatpush3.msra.mxu0 %v2964_v58  ;;  %2810 = vmatmul.mubr.msk.f32.vlgmr.msra.gmra.mxu1 %vm177_vm2, %v1954_v57 }
0x132b   :  { %2818 = vmatprep.subr.mxu0 %v3066_v0  ;;  %2824 = vmatpush3.msra.mxu1 %v2965_v59 }
0x132c   :  { %2819 = vmatpush3.msra.mxu0 %v2966_v60  ;;  %2825 = vmatprep.subr.mxu1 %v3066_v0  ;;  %v2320_v60 = vld [vmem:[%s3572_s6 + $0x18] sm:$0xff] }
0x132d   :  { %2821 = vmatmul.mubr.msk.f32.vlgmr.msra.gmra.mxu0 %vm177_vm2, %v1954_v57  ;;  %2834 = vmatprep.subr.mxu0 %v3066_v0 }
0x132e   :  { %2835 = vmatpush3.msra.mxu0 %v2967_v61  ;;  %2826 = vmatpush3.msra.mxu1 %v2968_v62  ;;  %v2319_v61 = vld [vmem:[%s3572_s6 + $0x10] sm:$0xff]  ;;  %v2318_v62 = vld [vmem:[%s3572_s6 + $0x8] sm:$0xff] }
0x132f   :  { %2836 = vmatprep.subr.mxu0 %v3066_v0  ;;  %2827 = vmatprep.subr.mxu1 %v3066_v0 }
0x1330   :  { %2837 = vmatpush3.msra.mxu0 %v2969_v63  ;;  %2828 = vmatpush3.msra.mxu1 %v2970_v1  ;;  %v2317_v63 = vld [vmem:[%s3572_s6] sm:$0xff]  ;;  %s2410_s6 = sshll.u32 %s3070_s16, 4  ;;  %s2411_s6 = int_to_ptr.vmem [resolvable:$true] %s2410_s6 }
0x1331   :  { %2838 = vmatprep.subr.mxu0 %v3066_v0  ;;  %2829 = vmatprep.subr.mxu1 %v3066_v0  ;;  %s3035_s17 = scalar_lea.vmem %s2411_s6, 32  ;;  %p3040_p2 = scmp.lt.s32.totalorder %s2411_s6, %s2411_s6 }
0x1332   :  { %2839 = vmatpush3.msra.mxu0 %v2971_v2  ;;  %2842 = vmatprep.mubr.msk.f32.mxu0 %vm3067_vm0, %v3066_v0  ;;  %p3036_p1 = scmp.ne.s32.totalorder %s2411_s6, %s3035_s17  ;;  %p3041_p3 = scmp.lt.s32.totalorder %s3035_s17, %s3035_s17 }
0x1333   :  { %2840 = vmatprep.subr.mxu0 %v3066_v0  ;;  %2830 = vmatpush3.msra.mxu1 %v2972_v3 }
0x1334   :  { %2841 = vmatpush3.msra.mxu0 %v2973_v8  ;;  %2831 = vmatprep.mubr.msk.f32.mxu1 %vm3067_vm0, %v3066_v0  ;;  %p3042_p4 = por %p3041_p3, %p3040_p2 }
0x1335   :  { %2845 = vmatprep.subr.mxu1 %v3066_v0 }
0x1336   :  { %p3043_p5 = pnand %p3042_p4, %p3036_p1 }
0x13e5   :  { %v1948_v9 = vpop.f32.mrf.mxu0 }
0x13e7   :  { %v2800_v10 = vpop.f32.mrf.mxu0 }
0x13ea   :  { %v2023_v11 = vpop.f32.mrf.mxu1 }
0x13eb   :  { %v2024_v12 = vadd.f32 %v2023_v11, %v1948_v9  ;;  %v2446_v9 = vld [vmem:[%s3573_s7] ss:$0 sm:$0xff] }
0x13ec   :  { %v2811_v13 = vpop.f32.mrf.mxu1 }
0x13ed   :  { %v2027_v14 = vadd.f32 %v3234_v41, %v2024_v12  ;;  %v2117_v16 = vpop.f32.mrf.mxu0 }
0x13ee   :  { %v2121_v17 = vadd.f32 %v2117_v16, %v2050_v15 }
0x13ef   :  { %2944 = vtanh.f32 %v2027_v14  ;;  %v2822_v18 = vpop.f32.mrf.mxu0  ;;  %v2029_v4 = vmul.f32 0.5, %v2027_v14 }
0x13f0   :  { %2946 = vtanh.f32 %v2121_v17  ;;  %v2123_v5 = vmul.f32 0.5, %v2121_v17 }
0x13f1   :  { %2948 = vtanh.f32 %v2029_v4 }
0x13f2   :  { %2950 = vtanh.f32 %v2123_v5 }
0x13fc   :  { %v2945_v19 = vpop.eup %2944 }
0x13fd   :  { %v2947_v20 = vpop.eup %2946  ;;  %2035 = vrot.lane.b32.xlu0 %v2945_v19, %s3068_s24 }
0x13fe   :  { %2129 = vrot.lane.b32.xlu1 %v2947_v20, %s3068_s24  ;;  %v2949_v6 = vpop.eup %2948 }
0x13ff   :  { %v2951_v7 = vpop.eup %2950  ;;  %v2031_v27 = vmul.f32 0.5, %v2949_v6 }
0x1400   :  { %v2125_v41 = vmul.f32 0.5, %v2951_v7 }
0x1401   :  { %v2032_v28 = vadd.f32 0.5, %v2031_v27 }
0x1402   :  { %v2126_v29 = vadd.f32 0.5, %v2125_v41 }
0x1403   :  { %v2033_v21 = vmul.f32 %v2032_v28, %v3491_v44 }
0x1404   :  { %v2127_v34 = vmul.f32 %v2126_v29, %v3495_v47 }
0x146f   :  { %v2036_v30 = vpop.permute.xlu0 %2035 }
0x1470   :  { %v2130_v31 = vpop.permute.xlu1 %2129  ;;  %v2038_v33 = vmul.f32 %v2036_v30, %v2032_v28 }
0x1471   :  { %v2132_v32 = vmul.f32 %v2130_v31, %v2126_v29 }
0x1472   :  { %2040 = vrot.lane.b32.xlu0 %v2038_v33, %s3069_s3 }
0x1473   :  { %2134 = vrot.lane.b32.xlu1 %v2132_v32, %s3069_s3 }
0x14e4   :  { %v2041_v22 = vpop.permute.xlu0 %2040 }
0x14e5   :  { %v2135_v23 = vpop.permute.xlu1 %2134  ;;  %v2043_v24 = vadd.f32 %v2041_v22, %v2033_v21 }
0x14e6   :  { %v2137_v25 = vadd.f32 %v2135_v23, %v2127_v34 }
0x14e7   :  { %2952 = vtanh.f32 %v2043_v24 }
0x14e8   :  { %2954 = vtanh.f32 %v2137_v25 }
0x14f4   :  { %v2953_v26 = vpop.eup %2952 }
0x14f5   :  { %v2955_v35 = vpop.eup %2954  ;;  %2046 = vrot.lane.b32.xlu0 %v2953_v26, %s3068_s24 }
0x14f6   :  { %2140 = vrot.lane.b32.xlu1 %v2955_v35, %s3068_s24 }
0x1567   :  { %v2047_v36 = vpop.permute.xlu0 %2046 }
0x1568   :  { %v2141_v37 = vpop.permute.xlu1 %2140  ;;  %v2049_v38 = vmul.f32 %v2047_v36, %v2032_v28 }
0x1569   :  { %v2143_v39 = vmul.f32 %v2141_v37, %v2126_v29 }
0x156a   :  { %2145 = vrot.lane.b32.xlu0 %v2049_v38, %s3069_s3 }
0x156b   :  { %2220 = vrot.lane.b32.xlu1 %v2143_v39, %s3069_s3 }
0x15dc   :  { %v2146_v40 = vpop.permute.xlu0 %2145 }
0x15dd   :  { %v2221_v42 = vpop.permute.xlu1 %2220  ;;  %2832 = vmatmul.mubr.msk.f32.vlgmr.msra.gmra.mxu1 %vm177_vm2, %v2146_v40 }
0x15de   :  { %2843 = vmatmul.mubr.msk.f32.vlgmr.msra.gmra.mxu0 %vm177_vm2, %v2221_v42  ;;  %2853 = vmatprep.mubr.msk.f32.mxu1 %vm3067_vm0, %v3066_v0 }
0x15df   :  { %2846 = vmatpush3.msra.mxu1 %v2320_v60 }
0x15e0   :  { %2847 = vmatprep.subr.mxu1 %v3066_v0 }
0x15e1   :  { %2848 = vmatpush3.msra.mxu1 %v2319_v61 }
0x15e2   :  { %2849 = vmatprep.subr.mxu1 %v3066_v0 }
0x15e3   :  { %2850 = vmatpush3.msra.mxu1 %v2318_v62 }
0x15e4   :  { %2851 = vmatprep.subr.mxu1 %v3066_v0 }
0x15e5   :  { %2852 = vmatpush3.msra.mxu1 %v2317_v63 }
0x169d   :  { %v2215_v43 = vpop.f32.mrf.mxu1 }
0x169e   :  { %v2290_v44 = vpop.f32.mrf.mxu0 }
0x169f   :  { %v2291_v45 = vadd.f32 %v2290_v44, %v2215_v43  ;;  %v2833_v46 = vpop.f32.mrf.mxu1 }
0x16a0   :  { %v2844_v47 = vpop.f32.mrf.mxu0 }
0x16a1   :  { %v2294_v49 = vadd.f32 %v2974_v48, %v2291_v45 }
0x16a3   :  { %2956 = vtanh.f32 %v2294_v49  ;;  %v2296_v51 = vmul.f32 0.5, %v2294_v49 }
0x16a5   :  { %2958 = vtanh.f32 %v2296_v51 }
0x16b0   :  { %v2957_v50 = vpop.eup %2956 }
0x16b1   :  { %2302 = vrot.lane.b32.xlu0 %v2957_v50, %s3068_s24 }
0x16b2   :  { %v2959_v52 = vpop.eup %2958 }
0x16b3   :  { %v2298_v53 = vmul.f32 0.5, %v2959_v52 }
0x16b5   :  { %v2299_v54 = vadd.f32 0.5, %v2298_v53 }
0x16b7   :  { %v2300_v57 = vmul.f32 %v2299_v54, %v2043_v24 }
0x1723   :  { %v2303_v55 = vpop.permute.xlu0 %2302 }
0x1724   :  { %v2305_v56 = vmul.f32 %v2303_v55, %v2299_v54 }
0x1726   :  { %2307 = vrot.lane.b32.xlu1 %v2305_v56, %s3069_s3 }
0x1798   :  { %v2308_v58 = vpop.permute.xlu1 %2307 }
0x1799   :  { %v2310_v59 = vadd.f32 %v2308_v58, %v2300_v57 }
0x179b   :  { %2960 = vtanh.f32 %v2310_v59 }
0x17a8   :  { %v2961_v1 = vpop.eup %2960 }
0x17a9   :  { %2313 = vrot.lane.b32.xlu0 %v2961_v1, %s3068_s24 }
0x181b   :  { %v2314_v2 = vpop.permute.xlu0 %2313 }
0x181c   :  { %v2316_v3 = vmul.f32 %v2314_v2, %v2299_v54 }
0x181e   :  { %2329 = vrot.lane.b32.xlu1 %v2316_v3, %s3069_s3 }
0x1890   :  { %v2330_v8 = vpop.permute.xlu1 %2329 }
0x1891   :  { %2854 = vmatmul.mubr.msk.f32.vlgmr.msra.gmra.mxu1 %vm177_vm2, %v2330_v8 }
0x1951   :  { %v2399_v10 = vpop.f32.mrf.mxu1 }
0x1952   :  { %v2400_v11 = vadd.f32 %v2446_v9, %v2399_v10 }
0x1953   :  { %v2855_v0 = vpop.f32.mrf.mxu1 }
0x1954   :  { %2403 = vst [vmem:[#allocation9] sm:$0x3] %v2400_v11 }
0x1955   :  { %3046 = shalt.err (!%p3043_p5)
}
0x1956   :  { %2413 = dma.vmem_to_hbm [thread:$0]  %s2411_s6, 32, %s3574_s8, [#allocation5]  }
0x1957   :  { %3059 = dma.done.wait [#allocation5], 32  }
0x1958   :  { %3060 = vsyncadd [#allocation5], 4294967264 }
0x1959   :  { %2417 = vsyncpa [#allocation4], 1 }
0x195a   :  { %2418 = vsyncpa [#allocation7], 1 }
0x195b   :  { %2419 = vsyncpa [#allocation5], 1 }

</bundles_post_ra>
